<compile_context>
chip_gen: v7x
topology: tpu7x:2x2x1
jax: 0.10.0
libtpu: 0.0.40
codegen_flags: <defaults>
</compile_context>

<pallas_src>
import jax
import jax.numpy as jnp
from jax.experimental import pallas as pl
from jax.experimental.pallas import tpu as pltpu

BN_EPS = 1e-5                      # PyTorch nn.BatchNorm2d default
VMEM_LIMIT_BYTES = 48 * 1024 * 1024   # explicit scoped-VMEM limit, headroom on v7x


def _round_up(x, m):
    return ((x + m - 1) // m) * m


# ---------------------------------------------------------------------------
# Pass 1: tiled conv-as-matmul (bf16 MXU, f32 accumulate) + per-tile BN partials
# ---------------------------------------------------------------------------
def _conv_stats_kernel(p_ref, w_ref, y_ref, st_ref):
    k = pl.program_id(1)

    @pl.when(k == 0)
    def _init():
        y_ref[...] = jnp.zeros_like(y_ref)

    y_ref[...] += jnp.dot(p_ref[...], w_ref[...],
                          preferred_element_type=jnp.float32)

    @pl.when(k == pl.num_programs(1) - 1)
    def _finalize():
        y = y_ref[...]
        s = jnp.sum(y, axis=0, keepdims=True)          # (1, Cout_p)
        ss = jnp.sum(y * y, axis=0, keepdims=True)     # (1, Cout_p)
        pad = jnp.zeros((6, y.shape[1]), jnp.float32)
        st_ref[...] = jnp.concatenate([s, ss, pad], axis=0)   # (8, Cout_p)


# ---------------------------------------------------------------------------
# Pass 2: normalize + optional residual + optional ReLU (per M tile)
# ---------------------------------------------------------------------------
def _make_bn_epilogue_kernel(has_residual: bool, apply_relu: bool):
    if has_residual:
        def kernel(y_ref, sc_ref, sh_ref, res_ref, o_ref):
            out = y_ref[...] * sc_ref[...] + sh_ref[...] + res_ref[...]
            if apply_relu:
                out = jnp.maximum(out, 0.0)
            o_ref[...] = out
    else:
        def kernel(y_ref, sc_ref, sh_ref, o_ref):
            out = y_ref[...] * sc_ref[...] + sh_ref[...]
            if apply_relu:
                out = jnp.maximum(out, 0.0)
            o_ref[...] = out
    return kernel


def conv_bn_pallas(x_nhwc, w_oihw, gamma, beta, *, stride, padding,
                   residual=None, relu=False, tile_m=512, tile_k=512):
    """conv(KHxKW, no bias) + training-mode BN (+residual)(+ReLU) via Pallas.

    x_nhwc   : (N, H, W, Cin)  float32
    w_oihw   : (Cout, Cin, KH, KW)  (PyTorch conv weight layout)
    residual : optional (M, Cout) flat residual (row order n*Ho*Wo + i*Wo + j)
    returns  : (out_flat (M, Cout) f32, (N, Ho, Wo, Cout))
    """
    N, H, W, Cin = x_nhwc.shape
    Cout, Cin_w, KH, KW = w_oihw.shape
    assert Cin == Cin_w
    Ho = (H + 2 * padding - KH) // stride + 1
    Wo = (W + 2 * padding - KW) // stride + 1
    M = N * Ho * Wo
    K = KH * KW * Cin

    # --- plain-JAX glue: zero-pad + im2col (fused by XLA under jit) ----------
    # TODO(synk): build the (TM, K) patch block inside the kernel from an input
    #             window tile to keep the KH*KW-inflated im2col traffic on-chip.
    x_pad = jnp.pad(x_nhwc, ((0, 0), (padding, padding), (padding, padding), (0, 0)))
    taps = []
    for kh in range(KH):
        for kw in range(KW):
            taps.append(x_pad[:, kh:kh + stride * Ho:stride,
                               kw:kw + stride * Wo:stride, :])
    patches = jnp.stack(taps, axis=3).reshape(M, K)             # K order (kh, kw, cin)
    w_mat = jnp.transpose(w_oihw, (2, 3, 1, 0)).reshape(K, Cout)

    # --- padding / tiling geometry ------------------------------------------
    Cout_p = _round_up(Cout, 128)            # lane-dense output / weight columns
    TM = min(tile_m, _round_up(M, 8))
    M_pad = _round_up(M, TM)
    if K > tile_k:
        assert tile_k % 128 == 0
        TK = tile_k
        K_pad = _round_up(K, TK)
    else:
        TK = K
        K_pad = K
    num_m = M_pad // TM
    num_k = K_pad // TK

    # zero padding: padded rows/cols contribute nothing to matmul or BN sums
    patches_p = jnp.pad(patches, ((0, M_pad - M), (0, K_pad - K))).astype(jnp.bfloat16)
    w_p = jnp.pad(w_mat, ((0, K_pad - K), (0, Cout_p - Cout))).astype(jnp.bfloat16)

    # --- pass 1: conv matmul + per-tile BN partial statistics ----------------
    y_flat, stats = pl.pallas_call(
        _conv_stats_kernel,
        out_shape=(jax.ShapeDtypeStruct((M_pad, Cout_p), jnp.float32),
                   jax.ShapeDtypeStruct((num_m * 8, Cout_p), jnp.float32)),
        grid=(num_m, num_k),
        in_specs=[pl.BlockSpec((TM, TK), lambda i, k: (i, k)),        # patches
                  pl.BlockSpec((TK, Cout_p), lambda i, k: (k, 0))],   # weights
        out_specs=(pl.BlockSpec((TM, Cout_p), lambda i, k: (i, 0)),   # conv output
                   pl.BlockSpec((8, Cout_p), lambda i, k: (i, 0))),   # BN partials
        compiler_params=pltpu.CompilerParams(
            dimension_semantics=("parallel", "arbitrary"),
            vmem_limit_bytes=VMEM_LIMIT_BYTES),
    )(patches_p, w_p)

    # --- tiny cross-tile reduction + BN affine folding (O(Cout) JAX glue) ----
    stats = stats.reshape(num_m, 8, Cout_p)
    total_sum = jnp.sum(stats[:, 0, :], axis=0)
    total_sq = jnp.sum(stats[:, 1, :], axis=0)
    mean = total_sum / M                                     # padded rows add 0
    var = jnp.maximum(total_sq / M - mean * mean, 0.0)       # biased (training) var
    gamma_p = jnp.pad(gamma.astype(jnp.float32), (0, Cout_p - Cout))
    beta_p = jnp.pad(beta.astype(jnp.float32), (0, Cout_p - Cout))
    scale_v = gamma_p * jax.lax.rsqrt(var + BN_EPS)
    shift_v = beta_p - mean * scale_v
    scale = scale_v.reshape(1, Cout_p)
    shift = shift_v.reshape(1, Cout_p)

    # --- pass 2: normalize + (residual) + (ReLU), tiled over M ---------------
    has_res = residual is not None
    operands = [y_flat, scale, shift]
    in_specs = [pl.BlockSpec((TM, Cout_p), lambda i: (i, 0)),
                pl.BlockSpec((1, Cout_p), lambda i: (0, 0)),
                pl.BlockSpec((1, Cout_p), lambda i: (0, 0))]
    if has_res:
        res_p = jnp.pad(residual.astype(jnp.float32),
                        ((0, M_pad - M), (0, Cout_p - Cout)))
        operands.append(res_p)
        in_specs.append(pl.BlockSpec((TM, Cout_p), lambda i: (i, 0)))

    out_flat = pl.pallas_call(
        _make_bn_epilogue_kernel(has_res, relu),
        out_shape=jax.ShapeDtypeStruct((M_pad, Cout_p), jnp.float32),
        grid=(num_m,),
        in_specs=in_specs,
        out_specs=pl.BlockSpec((TM, Cout_p), lambda i: (i, 0)),
        compiler_params=pltpu.CompilerParams(
            dimension_semantics=("parallel",),
            vmem_limit_bytes=VMEM_LIMIT_BYTES),
    )(*operands)

    return out_flat[:M, :Cout], (N, Ho, Wo, Cout)


def resblock_forward(x_nchw, params, stride, *, tile_m=512, tile_k=512):
    """ResBlock forward. Input/output in NCHW to match the PyTorch module."""
    x_nhwc = jnp.transpose(x_nchw, (0, 2, 3, 1)).astype(jnp.float32)
    N, H, W, Cin = x_nhwc.shape
    Cout = params["w1"].shape[0]

    # residual path (downsample conv+BN if needed, else identity)
    if stride != 1 or Cin != Cout:
        res_flat, _ = conv_bn_pallas(x_nhwc, params["w_ds"], params["g_ds"],
                                     params["b_ds"], stride=stride, padding=0,
                                     relu=False, tile_m=tile_m, tile_k=tile_k)
    else:
        res_flat = x_nhwc.reshape(N * H * W, Cin)

    # main path
    y1_flat, shp1 = conv_bn_pallas(x_nhwc, params["w1"], params["g1"], params["b1"],
                                   stride=stride, padding=1, relu=True,
                                   tile_m=tile_m, tile_k=tile_k)
    y1_nhwc = y1_flat.reshape(shp1)
    y2_flat, shp2 = conv_bn_pallas(y1_nhwc, params["w2"], params["g2"], params["b2"],
                                   stride=1, padding=1, residual=res_flat, relu=True,
                                   tile_m=tile_m, tile_k=tile_k)
    out_nhwc = y2_flat.reshape(shp2)
    return jnp.transpose(out_nhwc, (0, 3, 1, 2))


# ---------------------------------------------------------------------------
# pure-JAX reference (lax.conv) for correctness checks
# ---------------------------------------------------------------------------
def _ref_resblock(x, params, stride, *, bf16_matmul=True):
    def conv(x_, w_, s, p):
        if bf16_matmul:
            x_ = x_.astype(jnp.bfloat16)
            w_ = w_.astype(jnp.bfloat16)
            prec = jax.lax.Precision.DEFAULT
        else:
            prec = jax.lax.Precision.HIGHEST
        return jax.lax.conv_general_dilated(
            x_, w_, (s, s), [(p, p), (p, p)],
            dimension_numbers=("NCHW", "OIHW", "NCHW"),
            preferred_element_type=jnp.float32,
            precision=prec)

    def bn(y, g, b):
        mean = jnp.mean(y, axis=(0, 2, 3), keepdims=True)
        var = jnp.mean(jnp.square(y - mean), axis=(0, 2, 3), keepdims=True)
        return (y - mean) * jax.lax.rsqrt(var + BN_EPS) * g[None, :, None, None] \
            + b[None, :, None, None]

    Cin = x.shape[1]
    Cout = params["w1"].shape[0]
    if stride != 1 or Cin != Cout:
        res = bn(conv(x, params["w_ds"], stride, 0), params["g_ds"], params["b_ds"])
    else:
        res = x
    y = jax.nn.relu(bn(conv(x, params["w1"], stride, 1), params["g1"], params["b1"]))
    y = bn(conv(y, params["w2"], 1, 1), params["g2"], params["b2"])
    return jax.nn.relu(y + res)


if __name__ == "__main__":
    key = jax.random.PRNGKey(0)

    # ---- config 1: downsample branch (stride 2, Cin != Cout) ----------------
    N, Cin, H, W = 2, 4, 16, 16
    Cout, stride = 8, 2
    ks = jax.random.split(key, 16)
    params = {
        "w1":   0.1 * jax.random.normal(ks[0], (Cout, Cin, 3, 3), jnp.float32),
        "g1":   1.0 + 0.1 * jax.random.normal(ks[1], (Cout,), jnp.float32),
        "b1":   0.1 * jax.random.normal(ks[2], (Cout,), jnp.float32),
        "w2":   0.1 * jax.random.normal(ks[3], (Cout, Cout, 3, 3), jnp.float32),
        "g2":   1.0 + 0.1 * jax.random.normal(ks[4], (Cout,), jnp.float32),
        "b2":   0.1 * jax.random.normal(ks[5], (Cout,), jnp.float32),
        "w_ds": 0.1 * jax.random.normal(ks[6], (Cout, Cin, 1, 1), jnp.float32),
        "g_ds": 1.0 + 0.1 * jax.random.normal(ks[7], (Cout,), jnp.float32),
        "b_ds": 0.1 * jax.random.normal(ks[8], (Cout,), jnp.float32),
    }
    x = jax.random.normal(ks[9], (N, Cin, H, W), jnp.float32)

    fwd = jax.jit(lambda xx: resblock_forward(xx, params, stride))
    out = jax.block_until_ready(fwd(x))
    ref_b = jax.block_until_ready(_ref_resblock(x, params, stride, bf16_matmul=True))
    ref_f = jax.block_until_ready(_ref_resblock(x, params, stride, bf16_matmul=False))

    assert out.shape == (N, Cout, H // stride, W // stride), out.shape
    err_b = float(jnp.max(jnp.abs(out - ref_b)))
    err_f = float(jnp.max(jnp.abs(out - ref_f)))
    assert err_b < 1e-2, f"mismatch vs bf16-matmul reference: {err_b}"
    assert err_f < 5e-2, f"mismatch vs f32 reference: {err_f}"

    # multi-M-tile path (same numerics, smaller tiles)
    fwd_t = jax.jit(lambda xx: resblock_forward(xx, params, stride,
                                                tile_m=64, tile_k=128))
    out_t = jax.block_until_ready(fwd_t(x))
    err_t = float(jnp.max(jnp.abs(out_t - ref_b)))
    assert err_t < 1e-2, f"tiled-M mismatch vs reference: {err_t}"

    # ---- config 2: identity residual + multi-tile M and K -------------------
    N2, C2, H2, W2, stride2 = 2, 16, 8, 8, 1
    ks2 = jax.random.split(jax.random.PRNGKey(1), 8)
    params2 = {
        "w1": 0.1 * jax.random.normal(ks2[0], (C2, C2, 3, 3), jnp.float32),
        "g1": 1.0 + 0.1 * jax.random.normal(ks2[1], (C2,), jnp.float32),
        "b1": 0.1 * jax.random.normal(ks2[2], (C2,), jnp.float32),
        "w2": 0.1 * jax.random.normal(ks2[3], (C2, C2, 3, 3), jnp.float32),
        "g2": 1.0 + 0.1 * jax.random.normal(ks2[4], (C2,), jnp.float32),
        "b2": 0.1 * jax.random.normal(ks2[5], (C2,), jnp.float32),
    }
    x2 = jax.random.normal(ks2[6], (N2, C2, H2, W2), jnp.float32)

    fwd2 = jax.jit(lambda xx: resblock_forward(xx, params2, stride2,
                                               tile_m=32, tile_k=128))
    out2 = jax.block_until_ready(fwd2(x2))
    ref2 = jax.block_until_ready(_ref_resblock(x2, params2, stride2, bf16_matmul=True))
    assert out2.shape == (N2, C2, H2, W2), out2.shape
    err2 = float(jnp.max(jnp.abs(out2 - ref2)))
    assert err2 < 1e-2, f"multi-tile M/K mismatch vs reference: {err2}"

    print("KERNEL_OK")
</pallas_src>

<mosaic_0001>
module attributes {stable_mosaic.version = 11 : i64} {
  func.func @kernel(%arg0: i32, %arg1: memref<128x128xf32, #tpu.memory_space<vmem>>, %arg2: memref<1x128xf32, #tpu.memory_space<vmem>>, %arg3: memref<1x128xf32, #tpu.memory_space<vmem>>, %arg4: memref<128x128xf32, #tpu.memory_space<vmem>>) attributes {dimension_semantics = [#tpu.dimension_semantics<parallel>], iteration_bounds = array<i64: 1>, scalar_prefetch = 0 : i64, scratch_operands = 0 : i64, tpu.core_type = #tpu.core_type<tc>, window_params = [{transform_indices = @transform_0, window_bounds = array<i64: 128, 128>}, {pipeline_mode = #tpu.pipeline_mode<synchronous>, transform_indices = @transform_1, window_bounds = array<i64: 1, 128>}, {pipeline_mode = #tpu.pipeline_mode<synchronous>, transform_indices = @transform_2, window_bounds = array<i64: 1, 128>}, {transform_indices = @transform_3, window_bounds = array<i64: 128, 128>}]} {
    %c0 = arith.constant 0 : index
    %c0_0 = arith.constant 0 : index
    %0 = vector.load %arg1[%c0, %c0_0] : memref<128x128xf32, #tpu.memory_space<vmem>>, vector<128x128xf32>
    %c0_1 = arith.constant 0 : index
    %c0_2 = arith.constant 0 : index
    %1 = vector.load %arg2[%c0_1, %c0_2] : memref<1x128xf32, #tpu.memory_space<vmem>>, vector<1x128xf32>
    %2 = vector.broadcast %1 : vector<1x128xf32> to vector<128x128xf32>
    %3 = arith.mulf %0, %2 : vector<128x128xf32>
    %c0_3 = arith.constant 0 : index
    %c0_4 = arith.constant 0 : index
    %4 = vector.load %arg3[%c0_3, %c0_4] : memref<1x128xf32, #tpu.memory_space<vmem>>, vector<1x128xf32>
    %5 = vector.broadcast %4 : vector<1x128xf32> to vector<128x128xf32>
    %6 = arith.addf %3, %5 : vector<128x128xf32>
    %cst = arith.constant 0.000000e+00 : f32
    %7 = vector.broadcast %cst : f32 to vector<128x128xf32>
    %8 = arith.maximumf %6, %7 : vector<128x128xf32>
    %c0_5 = arith.constant 0 : index
    %c0_6 = arith.constant 0 : index
    %9 = vector.load %arg4[%c0_5, %c0_6] : memref<128x128xf32, #tpu.memory_space<vmem>>, vector<128x128xf32>
    tpu.vector_store %arg4[%c0_5, %c0_6], %8 {strides = array<i32>} : memref<128x128xf32, #tpu.memory_space<vmem>>, vector<128x128xf32>,
    return
  }
  func.func @transform_0(%arg0: i32) -> (i32, i32) {
    %c0_i32 = arith.constant 0 : i32
    %c0_i32_0 = arith.constant 0 : i32
    return %arg0, %c0_i32 : i32, i32
  }
  func.func @transform_1(%arg0: i32) -> (i32, i32) {
    %c0_i32 = arith.constant 0 : i32
    %c0_i32_0 = arith.constant 0 : i32
    %c0_i32_1 = arith.constant 0 : i32
    return %c0_i32, %c0_i32_0 : i32, i32
  }
  func.func @transform_2(%arg0: i32) -> (i32, i32) {
    %c0_i32 = arith.constant 0 : i32
    %c0_i32_0 = arith.constant 0 : i32
    %c0_i32_1 = arith.constant 0 : i32
    return %c0_i32, %c0_i32_0 : i32, i32
  }
  func.func @transform_3(%arg0: i32) -> (i32, i32) {
    %c0_i32 = arith.constant 0 : i32
    %c0_i32_0 = arith.constant 0 : i32
    return %arg0, %c0_i32 : i32, i32
  }
}

module attributes {stable_mosaic.version = 11 : i64} {
  func.func @_conv_stats_kernel(%arg0: i32, %arg1: i32, %arg2: memref<128x36xbf16, #tpu.memory_space<vmem>>, %arg3: memref<36x128xbf16, #tpu.memory_space<vmem>>, %arg4: memref<128x128xf32, #tpu.memory_space<vmem>>, %arg5: memref<8x128xf32, #tpu.memory_space<vmem>>) attributes {dimension_semantics = [#tpu.dimension_semantics<parallel>, #tpu.dimension_semantics<arbitrary>], iteration_bounds = array<i64: 1, 1>, scalar_prefetch = 0 : i64, scratch_operands = 0 : i64, tpu.core_type = #tpu.core_type<tc>, window_params = [{transform_indices = @transform_0, window_bounds = array<i64: 128, 36>}, {transform_indices = @transform_1, window_bounds = array<i64: 36, 128>}, {transform_indices = @transform_2, window_bounds = array<i64: 128, 128>}, {transform_indices = @transform_3, window_bounds = array<i64: 8, 128>}]} {
    %c0_i32 = arith.constant 0 : i32
    %0 = arith.cmpi eq, %arg1, %c0_i32 : i32
    %1 = arith.extui %0 : i1 to i32
    %c0_i32_0 = arith.constant 0 : i32
    %2 = arith.cmpi ne, %1, %c0_i32_0 : i32
    scf.if %2 {
      %cst_10 = arith.constant 0.000000e+00 : f32
      %12 = vector.broadcast %cst_10 : f32 to vector<128x128xf32>
      %c0_11 = arith.constant 0 : index
      %c0_12 = arith.constant 0 : index
      %13 = vector.load %arg4[%c0_11, %c0_12] : memref<128x128xf32, #tpu.memory_space<vmem>>, vector<128x128xf32>
      tpu.vector_store %arg4[%c0_11, %c0_12], %12 {strides = array<i32>} : memref<128x128xf32, #tpu.memory_space<vmem>>, vector<128x128xf32>,
    } else {
    }
    %c0 = arith.constant 0 : index
    %c0_1 = arith.constant 0 : index
    %3 = vector.load %arg4[%c0, %c0_1] : memref<128x128xf32, #tpu.memory_space<vmem>>, vector<128x128xf32>
    %c0_2 = arith.constant 0 : index
    %c0_3 = arith.constant 0 : index
    %4 = vector.load %arg2[%c0_2, %c0_3] : memref<128x36xbf16, #tpu.memory_space<vmem>>, vector<128x36xbf16>
    %c0_4 = arith.constant 0 : index
    %c0_5 = arith.constant 0 : index
    %5 = vector.load %arg3[%c0_4, %c0_5] : memref<36x128xbf16, #tpu.memory_space<vmem>>, vector<36x128xbf16>
    %cst = arith.constant dense<0.000000e+00> : vector<128x128xf32>
    %6 = tpu.matmul %4, %5, %cst {dimension_numbers = #tpu.dot_dimension_numbers<[1], [0], [0], [1], [0, 0, 1, 1], [], []>} : vector<128x36xbf16>, vector<36x128xbf16>, vector<128x128xf32> -> vector<128x128xf32>
    %7 = arith.addf %3, %6 : vector<128x128xf32>
    %c0_6 = arith.constant 0 : index
    %c0_7 = arith.constant 0 : index
    %8 = vector.load %arg4[%c0_6, %c0_7] : memref<128x128xf32, #tpu.memory_space<vmem>>, vector<128x128xf32>
    tpu.vector_store %arg4[%c0_6, %c0_7], %7 {strides = array<i32>} : memref<128x128xf32, #tpu.memory_space<vmem>>, vector<128x128xf32>,
    %c0_i32_8 = arith.constant 0 : i32
    %9 = arith.cmpi eq, %arg1, %c0_i32_8 : i32
    %10 = arith.extui %9 : i1 to i32
    %c0_i32_9 = arith.constant 0 : i32
    %11 = arith.cmpi ne, %10, %c0_i32_9 : i32
    scf.if %11 {
      %c0_10 = arith.constant 0 : index
      %c0_11 = arith.constant 0 : index
      %12 = vector.load %arg4[%c0_10, %c0_11] : memref<128x128xf32, #tpu.memory_space<vmem>>, vector<128x128xf32>
      %cst_12 = arith.constant dense<0.000000e+00> : vector<128xf32>
      %13 = vector.multi_reduction <add>, %12, %cst_12 [0] : vector<128x128xf32> to vector<128xf32>
      %14 = vector.shape_cast %13 : vector<128xf32> to vector<1x128xf32>
      %15 = arith.mulf %12, %12 : vector<128x128xf32>
      %cst_13 = arith.constant dense<0.000000e+00> : vector<128xf32>
      %16 = vector.multi_reduction <add>, %15, %cst_13 [0] : vector<128x128xf32> to vector<128xf32>
      %17 = vector.shape_cast %16 : vector<128xf32> to vector<1x128xf32>
      %cst_14 = arith.constant 0.000000e+00 : f32
      %18 = vector.broadcast %cst_14 : f32 to vector<6x128xf32>
      %19 = tpu.concatenate %14, %17, %18 in 0 : vector<1x128xf32>, vector<1x128xf32>, vector<6x128xf32> -> vector<8x128xf32>
      %c0_15 = arith.constant 0 : index
      %c0_16 = arith.constant 0 : index
      %20 = vector.load %arg5[%c0_15, %c0_16] : memref<8x128xf32, #tpu.memory_space<vmem>>, vector<8x128xf32>
      tpu.vector_store %arg5[%c0_15, %c0_16], %19 {strides = array<i32>} : memref<8x128xf32, #tpu.memory_space<vmem>>, vector<8x128xf32>,
    } else {
    }
    return
  }
  func.func @transform_0(%arg0: i32, %arg1: i32) -> (i32, i32) {
    %c0_i32 = arith.constant 0 : i32
    return %arg0, %arg1 : i32, i32
  }
  func.func @transform_1(%arg0: i32, %arg1: i32) -> (i32, i32) {
    %c0_i32 = arith.constant 0 : i32
    %c0_i32_0 = arith.constant 0 : i32
    return %arg1, %c0_i32 : i32, i32
  }
  func.func @transform_2(%arg0: i32, %arg1: i32) -> (i32, i32) {
    %c0_i32 = arith.constant 0 : i32
    %c0_i32_0 = arith.constant 0 : i32
    return %arg0, %c0_i32 : i32, i32
  }
  func.func @transform_3(%arg0: i32, %arg1: i32) -> (i32, i32) {
    %c0_i32 = arith.constant 0 : i32
    %c0_i32_0 = arith.constant 0 : i32
    return %arg0, %c0_i32 : i32, i32
  }
}

module attributes {stable_mosaic.version = 11 : i64} {
  func.func @_conv_stats_kernel(%arg0: i32, %arg1: i32, %arg2: memref<128x72xbf16, #tpu.memory_space<vmem>>, %arg3: memref<72x128xbf16, #tpu.memory_space<vmem>>, %arg4: memref<128x128xf32, #tpu.memory_space<vmem>>, %arg5: memref<8x128xf32, #tpu.memory_space<vmem>>) attributes {dimension_semantics = [#tpu.dimension_semantics<parallel>, #tpu.dimension_semantics<arbitrary>], iteration_bounds = array<i64: 1, 1>, scalar_prefetch = 0 : i64, scratch_operands = 0 : i64, tpu.core_type = #tpu.core_type<tc>, window_params = [{transform_indices = @transform_0, window_bounds = array<i64: 128, 72>}, {transform_indices = @transform_1, window_bounds = array<i64: 72, 128>}, {transform_indices = @transform_2, window_bounds = array<i64: 128, 128>}, {transform_indices = @transform_3, window_bounds = array<i64: 8, 128>}]} {
    %c0_i32 = arith.constant 0 : i32
    %0 = arith.cmpi eq, %arg1, %c0_i32 : i32
    %1 = arith.extui %0 : i1 to i32
    %c0_i32_0 = arith.constant 0 : i32
    %2 = arith.cmpi ne, %1, %c0_i32_0 : i32
    scf.if %2 {
      %cst_10 = arith.constant 0.000000e+00 : f32
      %12 = vector.broadcast %cst_10 : f32 to vector<128x128xf32>
      %c0_11 = arith.constant 0 : index
      %c0_12 = arith.constant 0 : index
      %13 = vector.load %arg4[%c0_11, %c0_12] : memref<128x128xf32, #tpu.memory_space<vmem>>, vector<128x128xf32>
      tpu.vector_store %arg4[%c0_11, %c0_12], %12 {strides = array<i32>} : memref<128x128xf32, #tpu.memory_space<vmem>>, vector<128x128xf32>,
    } else {
    }
    %c0 = arith.constant 0 : index
    %c0_1 = arith.constant 0 : index
    %3 = vector.load %arg4[%c0, %c0_1] : memref<128x128xf32, #tpu.memory_space<vmem>>, vector<128x128xf32>
    %c0_2 = arith.constant 0 : index
    %c0_3 = arith.constant 0 : index
    %4 = vector.load %arg2[%c0_2, %c0_3] : memref<128x72xbf16, #tpu.memory_space<vmem>>, vector<128x72xbf16>
    %c0_4 = arith.constant 0 : index
    %c0_5 = arith.constant 0 : index
    %5 = vector.load %arg3[%c0_4, %c0_5] : memref<72x128xbf16, #tpu.memory_space<vmem>>, vector<72x128xbf16>
    %cst = arith.constant dense<0.000000e+00> : vector<128x128xf32>
    %6 = tpu.matmul %4, %5, %cst {dimension_numbers = #tpu.dot_dimension_numbers<[1], [0], [0], [1], [0, 0, 1, 1], [], []>} : vector<128x72xbf16>, vector<72x128xbf16>, vector<128x128xf32> -> vector<128x128xf32>
    %7 = arith.addf %3, %6 : vector<128x128xf32>
    %c0_6 = arith.constant 0 : index
    %c0_7 = arith.constant 0 : index
    %8 = vector.load %arg4[%c0_6, %c0_7] : memref<128x128xf32, #tpu.memory_space<vmem>>, vector<128x128xf32>
    tpu.vector_store %arg4[%c0_6, %c0_7], %7 {strides = array<i32>} : memref<128x128xf32, #tpu.memory_space<vmem>>, vector<128x128xf32>,
    %c0_i32_8 = arith.constant 0 : i32
    %9 = arith.cmpi eq, %arg1, %c0_i32_8 : i32
    %10 = arith.extui %9 : i1 to i32
    %c0_i32_9 = arith.constant 0 : i32
    %11 = arith.cmpi ne, %10, %c0_i32_9 : i32
    scf.if %11 {
      %c0_10 = arith.constant 0 : index
      %c0_11 = arith.constant 0 : index
      %12 = vector.load %arg4[%c0_10, %c0_11] : memref<128x128xf32, #tpu.memory_space<vmem>>, vector<128x128xf32>
      %cst_12 = arith.constant dense<0.000000e+00> : vector<128xf32>
      %13 = vector.multi_reduction <add>, %12, %cst_12 [0] : vector<128x128xf32> to vector<128xf32>
      %14 = vector.shape_cast %13 : vector<128xf32> to vector<1x128xf32>
      %15 = arith.mulf %12, %12 : vector<128x128xf32>
      %cst_13 = arith.constant dense<0.000000e+00> : vector<128xf32>
      %16 = vector.multi_reduction <add>, %15, %cst_13 [0] : vector<128x128xf32> to vector<128xf32>
      %17 = vector.shape_cast %16 : vector<128xf32> to vector<1x128xf32>
      %cst_14 = arith.constant 0.000000e+00 : f32
      %18 = vector.broadcast %cst_14 : f32 to vector<6x128xf32>
      %19 = tpu.concatenate %14, %17, %18 in 0 : vector<1x128xf32>, vector<1x128xf32>, vector<6x128xf32> -> vector<8x128xf32>
      %c0_15 = arith.constant 0 : index
      %c0_16 = arith.constant 0 : index
      %20 = vector.load %arg5[%c0_15, %c0_16] : memref<8x128xf32, #tpu.memory_space<vmem>>, vector<8x128xf32>
      tpu.vector_store %arg5[%c0_15, %c0_16], %19 {strides = array<i32>} : memref<8x128xf32, #tpu.memory_space<vmem>>, vector<8x128xf32>,
    } else {
    }
    return
  }
  func.func @transform_0(%arg0: i32, %arg1: i32) -> (i32, i32) {
    %c0_i32 = arith.constant 0 : i32
    return %arg0, %arg1 : i32, i32
  }
  func.func @transform_1(%arg0: i32, %arg1: i32) -> (i32, i32) {
    %c0_i32 = arith.constant 0 : i32
    %c0_i32_0 = arith.constant 0 : i32
    return %arg1, %c0_i32 : i32, i32
  }
  func.func @transform_2(%arg0: i32, %arg1: i32) -> (i32, i32) {
    %c0_i32 = arith.constant 0 : i32
    %c0_i32_0 = arith.constant 0 : i32
    return %arg0, %c0_i32 : i32, i32
  }
  func.func @transform_3(%arg0: i32, %arg1: i32) -> (i32, i32) {
    %c0_i32 = arith.constant 0 : i32
    %c0_i32_0 = arith.constant 0 : i32
    return %arg0, %c0_i32 : i32, i32
  }
}

module attributes {stable_mosaic.version = 11 : i64} {
  func.func @kernel(%arg0: i32, %arg1: memref<128x128xf32, #tpu.memory_space<vmem>>, %arg2: memref<1x128xf32, #tpu.memory_space<vmem>>, %arg3: memref<1x128xf32, #tpu.memory_space<vmem>>, %arg4: memref<128x128xf32, #tpu.memory_space<vmem>>) attributes {dimension_semantics = [#tpu.dimension_semantics<parallel>], iteration_bounds = array<i64: 1>, scalar_prefetch = 0 : i64, scratch_operands = 0 : i64, tpu.core_type = #tpu.core_type<tc>, window_params = [{transform_indices = @transform_0, window_bounds = array<i64: 128, 128>}, {pipeline_mode = #tpu.pipeline_mode<synchronous>, transform_indices = @transform_1, window_bounds = array<i64: 1, 128>}, {pipeline_mode = #tpu.pipeline_mode<synchronous>, transform_indices = @transform_2, window_bounds = array<i64: 1, 128>}, {transform_indices = @transform_3, window_bounds = array<i64: 128, 128>}]} {
    %c0 = arith.constant 0 : index
    %c0_0 = arith.constant 0 : index
    %0 = vector.load %arg1[%c0, %c0_0] : memref<128x128xf32, #tpu.memory_space<vmem>>, vector<128x128xf32>
    %c0_1 = arith.constant 0 : index
    %c0_2 = arith.constant 0 : index
    %1 = vector.load %arg2[%c0_1, %c0_2] : memref<1x128xf32, #tpu.memory_space<vmem>>, vector<1x128xf32>
    %2 = vector.broadcast %1 : vector<1x128xf32> to vector<128x128xf32>
    %3 = arith.mulf %0, %2 : vector<128x128xf32>
    %c0_3 = arith.constant 0 : index
    %c0_4 = arith.constant 0 : index
    %4 = vector.load %arg3[%c0_3, %c0_4] : memref<1x128xf32, #tpu.memory_space<vmem>>, vector<1x128xf32>
    %5 = vector.broadcast %4 : vector<1x128xf32> to vector<128x128xf32>
    %6 = arith.addf %3, %5 : vector<128x128xf32>
    %c0_5 = arith.constant 0 : index
    %c0_6 = arith.constant 0 : index
    %7 = vector.load %arg4[%c0_5, %c0_6] : memref<128x128xf32, #tpu.memory_space<vmem>>, vector<128x128xf32>
    tpu.vector_store %arg4[%c0_5, %c0_6], %6 {strides = array<i32>} : memref<128x128xf32, #tpu.memory_space<vmem>>, vector<128x128xf32>,
    return
  }
  func.func @transform_0(%arg0: i32) -> (i32, i32) {
    %c0_i32 = arith.constant 0 : i32
    %c0_i32_0 = arith.constant 0 : i32
    return %arg0, %c0_i32 : i32, i32
  }
  func.func @transform_1(%arg0: i32) -> (i32, i32) {
    %c0_i32 = arith.constant 0 : i32
    %c0_i32_0 = arith.constant 0 : i32
    %c0_i32_1 = arith.constant 0 : i32
    return %c0_i32, %c0_i32_0 : i32, i32
  }
  func.func @transform_2(%arg0: i32) -> (i32, i32) {
    %c0_i32 = arith.constant 0 : i32
    %c0_i32_0 = arith.constant 0 : i32
    %c0_i32_1 = arith.constant 0 : i32
    return %c0_i32, %c0_i32_0 : i32, i32
  }
  func.func @transform_3(%arg0: i32) -> (i32, i32) {
    %c0_i32 = arith.constant 0 : i32
    %c0_i32_0 = arith.constant 0 : i32
    return %arg0, %c0_i32 : i32, i32
  }
}

module attributes {stable_mosaic.version = 11 : i64} {
  func.func @_conv_stats_kernel(%arg0: i32, %arg1: i32, %arg2: memref<128x4xbf16, #tpu.memory_space<vmem>>, %arg3: memref<4x128xbf16, #tpu.memory_space<vmem>>, %arg4: memref<128x128xf32, #tpu.memory_space<vmem>>, %arg5: memref<8x128xf32, #tpu.memory_space<vmem>>) attributes {dimension_semantics = [#tpu.dimension_semantics<parallel>, #tpu.dimension_semantics<arbitrary>], iteration_bounds = array<i64: 1, 1>, scalar_prefetch = 0 : i64, scratch_operands = 0 : i64, tpu.core_type = #tpu.core_type<tc>, window_params = [{transform_indices = @transform_0, window_bounds = array<i64: 128, 4>}, {transform_indices = @transform_1, window_bounds = array<i64: 4, 128>}, {transform_indices = @transform_2, window_bounds = array<i64: 128, 128>}, {transform_indices = @transform_3, window_bounds = array<i64: 8, 128>}]} {
    %c0_i32 = arith.constant 0 : i32
    %0 = arith.cmpi eq, %arg1, %c0_i32 : i32
    %1 = arith.extui %0 : i1 to i32
    %c0_i32_0 = arith.constant 0 : i32
    %2 = arith.cmpi ne, %1, %c0_i32_0 : i32
    scf.if %2 {
      %cst_10 = arith.constant 0.000000e+00 : f32
      %12 = vector.broadcast %cst_10 : f32 to vector<128x128xf32>
      %c0_11 = arith.constant 0 : index
      %c0_12 = arith.constant 0 : index
      %13 = vector.load %arg4[%c0_11, %c0_12] : memref<128x128xf32, #tpu.memory_space<vmem>>, vector<128x128xf32>
      tpu.vector_store %arg4[%c0_11, %c0_12], %12 {strides = array<i32>} : memref<128x128xf32, #tpu.memory_space<vmem>>, vector<128x128xf32>,
    } else {
    }
    %c0 = arith.constant 0 : index
    %c0_1 = arith.constant 0 : index
    %3 = vector.load %arg4[%c0, %c0_1] : memref<128x128xf32, #tpu.memory_space<vmem>>, vector<128x128xf32>
    %c0_2 = arith.constant 0 : index
    %c0_3 = arith.constant 0 : index
    %4 = vector.load %arg2[%c0_2, %c0_3] : memref<128x4xbf16, #tpu.memory_space<vmem>>, vector<128x4xbf16>
    %c0_4 = arith.constant 0 : index
    %c0_5 = arith.constant 0 : index
    %5 = vector.load %arg3[%c0_4, %c0_5] : memref<4x128xbf16, #tpu.memory_space<vmem>>, vector<4x128xbf16>
    %cst = arith.constant dense<0.000000e+00> : vector<128x128xf32>
    %6 = tpu.matmul %4, %5, %cst {dimension_numbers = #tpu.dot_dimension_numbers<[1], [0], [0], [1], [0, 0, 1, 1], [], []>} : vector<128x4xbf16>, vector<4x128xbf16>, vector<128x128xf32> -> vector<128x128xf32>
    %7 = arith.addf %3, %6 : vector<128x128xf32>
    %c0_6 = arith.constant 0 : index
    %c0_7 = arith.constant 0 : index
    %8 = vector.load %arg4[%c0_6, %c0_7] : memref<128x128xf32, #tpu.memory_space<vmem>>, vector<128x128xf32>
    tpu.vector_store %arg4[%c0_6, %c0_7], %7 {strides = array<i32>} : memref<128x128xf32, #tpu.memory_space<vmem>>, vector<128x128xf32>,
    %c0_i32_8 = arith.constant 0 : i32
    %9 = arith.cmpi eq, %arg1, %c0_i32_8 : i32
    %10 = arith.extui %9 : i1 to i32
    %c0_i32_9 = arith.constant 0 : i32
    %11 = arith.cmpi ne, %10, %c0_i32_9 : i32
    scf.if %11 {
      %c0_10 = arith.constant 0 : index
      %c0_11 = arith.constant 0 : index
      %12 = vector.load %arg4[%c0_10, %c0_11] : memref<128x128xf32, #tpu.memory_space<vmem>>, vector<128x128xf32>
      %cst_12 = arith.constant dense<0.000000e+00> : vector<128xf32>
      %13 = vector.multi_reduction <add>, %12, %cst_12 [0] : vector<128x128xf32> to vector<128xf32>
      %14 = vector.shape_cast %13 : vector<128xf32> to vector<1x128xf32>
      %15 = arith.mulf %12, %12 : vector<128x128xf32>
      %cst_13 = arith.constant dense<0.000000e+00> : vector<128xf32>
      %16 = vector.multi_reduction <add>, %15, %cst_13 [0] : vector<128x128xf32> to vector<128xf32>
      %17 = vector.shape_cast %16 : vector<128xf32> to vector<1x128xf32>
      %cst_14 = arith.constant 0.000000e+00 : f32
      %18 = vector.broadcast %cst_14 : f32 to vector<6x128xf32>
      %19 = tpu.concatenate %14, %17, %18 in 0 : vector<1x128xf32>, vector<1x128xf32>, vector<6x128xf32> -> vector<8x128xf32>
      %c0_15 = arith.constant 0 : index
      %c0_16 = arith.constant 0 : index
      %20 = vector.load %arg5[%c0_15, %c0_16] : memref<8x128xf32, #tpu.memory_space<vmem>>, vector<8x128xf32>
      tpu.vector_store %arg5[%c0_15, %c0_16], %19 {strides = array<i32>} : memref<8x128xf32, #tpu.memory_space<vmem>>, vector<8x128xf32>,
    } else {
    }
    return
  }
  func.func @transform_0(%arg0: i32, %arg1: i32) -> (i32, i32) {
    %c0_i32 = arith.constant 0 : i32
    return %arg0, %arg1 : i32, i32
  }
  func.func @transform_1(%arg0: i32, %arg1: i32) -> (i32, i32) {
    %c0_i32 = arith.constant 0 : i32
    %c0_i32_0 = arith.constant 0 : i32
    return %arg1, %c0_i32 : i32, i32
  }
  func.func @transform_2(%arg0: i32, %arg1: i32) -> (i32, i32) {
    %c0_i32 = arith.constant 0 : i32
    %c0_i32_0 = arith.constant 0 : i32
    return %arg0, %c0_i32 : i32, i32
  }
  func.func @transform_3(%arg0: i32, %arg1: i32) -> (i32, i32) {
    %c0_i32 = arith.constant 0 : i32
    %c0_i32_0 = arith.constant 0 : i32
    return %arg0, %c0_i32 : i32, i32
  }
}

module attributes {stable_mosaic.version = 11 : i64} {
  func.func @kernel(%arg0: i32, %arg1: memref<128x128xf32, #tpu.memory_space<vmem>>, %arg2: memref<1x128xf32, #tpu.memory_space<vmem>>, %arg3: memref<1x128xf32, #tpu.memory_space<vmem>>, %arg4: memref<128x128xf32, #tpu.memory_space<vmem>>, %arg5: memref<128x128xf32, #tpu.memory_space<vmem>>) attributes {dimension_semantics = [#tpu.dimension_semantics<parallel>], iteration_bounds = array<i64: 1>, scalar_prefetch = 0 : i64, scratch_operands = 0 : i64, tpu.core_type = #tpu.core_type<tc>, window_params = [{transform_indices = @transform_0, window_bounds = array<i64: 128, 128>}, {pipeline_mode = #tpu.pipeline_mode<synchronous>, transform_indices = @transform_1, window_bounds = array<i64: 1, 128>}, {pipeline_mode = #tpu.pipeline_mode<synchronous>, transform_indices = @transform_2, window_bounds = array<i64: 1, 128>}, {transform_indices = @transform_3, window_bounds = array<i64: 128, 128>}, {transform_indices = @transform_4, window_bounds = array<i64: 128, 128>}]} {
    %c0 = arith.constant 0 : index
    %c0_0 = arith.constant 0 : index
    %0 = vector.load %arg1[%c0, %c0_0] : memref<128x128xf32, #tpu.memory_space<vmem>>, vector<128x128xf32>
    %c0_1 = arith.constant 0 : index
    %c0_2 = arith.constant 0 : index
    %1 = vector.load %arg2[%c0_1, %c0_2] : memref<1x128xf32, #tpu.memory_space<vmem>>, vector<1x128xf32>
    %2 = vector.broadcast %1 : vector<1x128xf32> to vector<128x128xf32>
    %3 = arith.mulf %0, %2 : vector<128x128xf32>
    %c0_3 = arith.constant 0 : index
    %c0_4 = arith.constant 0 : index
    %4 = vector.load %arg3[%c0_3, %c0_4] : memref<1x128xf32, #tpu.memory_space<vmem>>, vector<1x128xf32>
    %5 = vector.broadcast %4 : vector<1x128xf32> to vector<128x128xf32>
    %6 = arith.addf %3, %5 : vector<128x128xf32>
    %c0_5 = arith.constant 0 : index
    %c0_6 = arith.constant 0 : index
    %7 = vector.load %arg4[%c0_5, %c0_6] : memref<128x128xf32, #tpu.memory_space<vmem>>, vector<128x128xf32>
    %8 = arith.addf %6, %7 : vector<128x128xf32>
    %cst = arith.constant 0.000000e+00 : f32
    %9 = vector.broadcast %cst : f32 to vector<128x128xf32>
    %10 = arith.maximumf %8, %9 : vector<128x128xf32>
    %c0_7 = arith.constant 0 : index
    %c0_8 = arith.constant 0 : index
    %11 = vector.load %arg5[%c0_7, %c0_8] : memref<128x128xf32, #tpu.memory_space<vmem>>, vector<128x128xf32>
    tpu.vector_store %arg5[%c0_7, %c0_8], %10 {strides = array<i32>} : memref<128x128xf32, #tpu.memory_space<vmem>>, vector<128x128xf32>,
    return
  }
  func.func @transform_0(%arg0: i32) -> (i32, i32) {
    %c0_i32 = arith.constant 0 : i32
    %c0_i32_0 = arith.constant 0 : i32
    return %arg0, %c0_i32 : i32, i32
  }
  func.func @transform_1(%arg0: i32) -> (i32, i32) {
    %c0_i32 = arith.constant 0 : i32
    %c0_i32_0 = arith.constant 0 : i32
    %c0_i32_1 = arith.constant 0 : i32
    return %c0_i32, %c0_i32_0 : i32, i32
  }
  func.func @transform_2(%arg0: i32) -> (i32, i32) {
    %c0_i32 = arith.constant 0 : i32
    %c0_i32_0 = arith.constant 0 : i32
    %c0_i32_1 = arith.constant 0 : i32
    return %c0_i32, %c0_i32_0 : i32, i32
  }
  func.func @transform_3(%arg0: i32) -> (i32, i32) {
    %c0_i32 = arith.constant 0 : i32
    %c0_i32_0 = arith.constant 0 : i32
    return %arg0, %c0_i32 : i32, i32
  }
  func.func @transform_4(%arg0: i32) -> (i32, i32) {
    %c0_i32 = arith.constant 0 : i32
    %c0_i32_0 = arith.constant 0 : i32
    return %arg0, %c0_i32 : i32, i32
  }
}

</mosaic_0001>

<bundles_post_ra>
// kernel: _lambda_.9
= control target key start
LH: loop header
LB: loop body
LE: loop exit
PB: predicated region body
PF: predicated region fallthrough
CT: control target
= control target key end

     0   :  { %s254_s0 = inlined_call_operand.vmem [shape: f32[128,128], index: 0, kind: input, shape index: {}]   ;;  %s255_s1 = inlined_call_operand.vmem [shape: f32[1,128], index: 1, kind: input, shape index: {}]   ;;  %s256_s2 = inlined_call_operand.vmem [shape: f32[1,128], index: 2, kind: input, shape index: {}]   ;;  %s257_s3 = inlined_call_operand.vmem [shape: f32[128,128], index: 3, kind: output, shape index: {}]  }
   0x1   :  { %v14_v0 = vld [vmem:[%s254_s0] sm:$0xff]  ;;  %v15_v4 = vld [vmem:[%s254_s0 + $0x8] sm:$0xff]  ;;  %v16_v5 = vld [vmem:[%s254_s0 + $0x10] sm:$0xff] }
   0x2   :  { %v112_v1 = vld [vmem:[%s255_s1] ss:$0 sm:$0xff]  ;;  %v17_v6 = vld [vmem:[%s254_s0 + $0x18] sm:$0xff]  ;;  %v19_v11 = vld [vmem:[%s254_s0 + $0x28] sm:$0xff] }
   0x3   :  { %v143_v2 = vld [vmem:[%s256_s2] ss:$0 sm:$0xff]  ;;  %v37_v3 = vmul.f32 %v112_v1, %v14_v0  ;;  %v38_v7 = vmul.f32 %v112_v1, %v15_v4  ;;  %v39_v8 = vmul.f32 %v112_v1, %v16_v5  ;;  %v40_v9 = vmul.f32 %v112_v1, %v17_v6  ;;  %v20_v12 = vld [vmem:[%s254_s0 + $0x30] sm:$0xff]  ;;  %v21_v17 = vld [vmem:[%s254_s0 + $0x38] sm:$0xff] }
   0x4   :  { %v18_v10 = vld [vmem:[%s254_s0 + $0x20] sm:$0xff]  ;;  %v42_v15 = vmul.f32 %v112_v1, %v19_v11  ;;  %v43_v16 = vmul.f32 %v112_v1, %v20_v12  ;;  %v44_v21 = vmul.f32 %v112_v1, %v21_v17  ;;  %v23_v27 = vld [vmem:[%s254_s0 + $0x48] sm:$0xff]  ;;  %v24_v28 = vld [vmem:[%s254_s0 + $0x50] sm:$0xff] }
   0x5   :  { %v60_v13 = vadd.f32 %v143_v2, %v37_v3  ;;  %v41_v14 = vmul.f32 %v112_v1, %v18_v10  ;;  %v61_v18 = vadd.f32 %v143_v2, %v38_v7  ;;  %v62_v19 = vadd.f32 %v143_v2, %v39_v8  ;;  %v22_v22 = vld [vmem:[%s254_s0 + $0x40] sm:$0xff]  ;;  %v25_v29 = vld [vmem:[%s254_s0 + $0x58] sm:$0xff]  ;;  %v27_v35 = vld [vmem:[%s254_s0 + $0x68] sm:$0xff] }
   0x6   :  { %v63_v20 = vadd.f32 %v143_v2, %v40_v9  ;;  %v65_v25 = vadd.f32 %v143_v2, %v42_v15  ;;  %v66_v26 = vadd.f32 %v143_v2, %v43_v16  ;;  %v67_v33 = vadd.f32 %v143_v2, %v44_v21  ;;  %v26_v34 = vld [vmem:[%s254_s0 + $0x60] sm:$0xff]  ;;  %v28_v36 = vld [vmem:[%s254_s0 + $0x70] sm:$0xff]  ;;  %v29_v41 = vld [vmem:[%s254_s0 + $0x78] sm:$0xff] }
   0x7   :  { %v76_v23 = vmax.f32 %v60_v13, 0.0  ;;  %v64_v24 = vadd.f32 %v143_v2, %v41_v14  ;;  %v77_v30 = vmax.f32 %v61_v18, 0.0  ;;  %v78_v31 = vmax.f32 %v62_v19, 0.0 }
   0x8   :  { %v79_v32 = vmax.f32 %v63_v20, 0.0  ;;  %v81_v38 = vmax.f32 %v65_v25, 0.0  ;;  %v82_v39 = vmax.f32 %v66_v26, 0.0  ;;  %v45_v40 = vmul.f32 %v112_v1, %v22_v22 }
   0x9   :  { %92 = vst [vmem:[%s257_s3] sm:$0xff] %v76_v23  ;;  %v80_v37 = vmax.f32 %v64_v24, 0.0  ;;  %93 = vst [vmem:[%s257_s3 + $0x8] sm:$0xff] %v77_v30  ;;  %v83_v42 = vmax.f32 %v67_v33, 0.0  ;;  %v46_v43 = vmul.f32 %v112_v1, %v23_v27  ;;  %v47_v44 = vmul.f32 %v112_v1, %v24_v28 }
   0xa   :  { %94 = vst [vmem:[%s257_s3 + $0x10] sm:$0xff] %v78_v31  ;;  %95 = vst [vmem:[%s257_s3 + $0x18] sm:$0xff] %v79_v32  ;;  %v48_v45 = vmul.f32 %v112_v1, %v25_v29  ;;  %v68_v46 = vadd.f32 %v143_v2, %v45_v40  ;;  %v49_v47 = vmul.f32 %v112_v1, %v26_v34 }
   0xb   :  { %96 = vst [vmem:[%s257_s3 + $0x20] sm:$0xff] %v80_v37  ;;  %97 = vst [vmem:[%s257_s3 + $0x28] sm:$0xff] %v81_v38  ;;  %v50_v48 = vmul.f32 %v112_v1, %v27_v35  ;;  %v51_v49 = vmul.f32 %v112_v1, %v28_v36  ;;  %v69_v50 = vadd.f32 %v143_v2, %v46_v43 }
   0xc   :  { %98 = vst [vmem:[%s257_s3 + $0x30] sm:$0xff] %v82_v39  ;;  %99 = vst [vmem:[%s257_s3 + $0x38] sm:$0xff] %v83_v42  ;;  %v70_v51 = vadd.f32 %v143_v2, %v47_v44  ;;  %v71_v52 = vadd.f32 %v143_v2, %v48_v45  ;;  %v52_v53 = vmul.f32 %v112_v1, %v29_v41  ;;  %v84_v54 = vmax.f32 %v68_v46, 0.0 }
   0xd   :  { %v72_v55 = vadd.f32 %v143_v2, %v49_v47  ;;  %v73_v56 = vadd.f32 %v143_v2, %v50_v48  ;;  %v74_v57 = vadd.f32 %v143_v2, %v51_v49  ;;  %v85_v58 = vmax.f32 %v69_v50, 0.0 }
   0xe   :  { %v86_v59 = vmax.f32 %v70_v51, 0.0  ;;  %v87_v60 = vmax.f32 %v71_v52, 0.0  ;;  %v75_v61 = vadd.f32 %v143_v2, %v52_v53  ;;  %100 = vst [vmem:[%s257_s3 + $0x40] sm:$0xff] %v84_v54 }
   0xf   :  { %v88_v62 = vmax.f32 %v72_v55, 0.0  ;;  %v89_v63 = vmax.f32 %v73_v56, 0.0  ;;  %v90_v0 = vmax.f32 %v74_v57, 0.0  ;;  %101 = vst [vmem:[%s257_s3 + $0x48] sm:$0xff] %v85_v58 }
  0x10   :  { %102 = vst [vmem:[%s257_s3 + $0x50] sm:$0xff] %v86_v59  ;;  %103 = vst [vmem:[%s257_s3 + $0x58] sm:$0xff] %v87_v60  ;;  %v91_v1 = vmax.f32 %v75_v61, 0.0 }
  0x11   :  { %104 = vst [vmem:[%s257_s3 + $0x60] sm:$0xff] %v88_v62  ;;  %105 = vst [vmem:[%s257_s3 + $0x68] sm:$0xff] %v89_v63 }
  0x12   :  { %106 = vst [vmem:[%s257_s3 + $0x70] sm:$0xff] %v90_v0  ;;  %107 = vst [vmem:[%s257_s3 + $0x78] sm:$0xff] %v91_v1 }

// kernel: _lambda_.8
= control target key start
LH: loop header
LB: loop body
LE: loop exit
PB: predicated region body
PF: predicated region fallthrough
CT: control target
= control target key end

     0   :  { %vm126_vm0 = vcmask 293888   ;;  %vm151_vm1 = vcmask 1041408   ;;  %vm361_vm2 = vcmask 1040384   ;;  %s561_s1 = inlined_call_operand.vmem [shape: bf16[36,128], index: 1, kind: input, shape index: {}]   ;;  %s562_s0 = inlined_call_operand.vmem [shape: bf16[128,36], index: 0, kind: input, shape index: {}]   ;;  %s563_s2 = inlined_call_operand.vmem [shape: f32[128,128], index: 2, kind: output, shape index: {0}]   ;;  %s564_s3 = inlined_call_operand.vmem [shape: f32[8,128], index: 3, kind: output, shape index: {1}]  }
   0x1   :  { %v434_v0 = vld [vmem:[%s561_s1] sm:$0xff]   ;;  %v435_v1 = vld [vmem:[%s561_s1 + $0x8] sm:$0xff]   ;;  %v436_v2 = vld [vmem:[%s561_s1 + $0x10] ss:$0 sps:$4 sm:$0x33]  }
   0x2   :  { %403 = vmatprep.subr.bf16.mxu0 %v434_v0  ;;  %v437_v3 = vld [vmem:[%s562_s0] sm:$0xff]   ;;  %425 = vmatprep.subr.bf16.mxu1 %v434_v0  ;;  %v153_v5 = vsel %vm151_vm1, %v436_v2, 0  ;;  %v438_v6 = vld [vmem:[%s562_s0 + $0x8] sm:$0xff]   ;;  %v439_v8 = vld [vmem:[%s562_s0 + $0x10] sm:$0xff]  }
   0x3   :  { %404 = vmatpush3.bf16.msra.mxu0 %v434_v0  ;;  %428 = vmatpush3.bf16.msra.mxu1 %v434_v0  ;;  %v441_v4 = vld [vmem:[%s562_s0 + $0x20] sm:$0xff]   ;;  %v442_v7 = vld [vmem:[%s562_s0 + $0x28] sm:$0xff]   ;;  %v443_v9 = vld [vmem:[%s562_s0 + $0x30] sm:$0xff]  }
   0x4   :  { %405 = vmatprep.subr.bf16.mxu0 %v435_v1  ;;  %409 = vmatprep.mubr.msk.bf16.mxu0 %vm126_vm0, %v437_v3  ;;  %v440_v10 = vld [vmem:[%s562_s0 + $0x18] sm:$0xff]  }
   0x5   :  { %426 = vmatprep.subr.bf16.mxu1 %v435_v1  ;;  %417 = vmatprep.mubr.msk.bf16.mxu1 %vm126_vm0, %v441_v4  ;;  %v444_v11 = vld [vmem:[%s562_s0 + $0x38] sm:$0xff]  }
   0x7   :  { %406 = vmatpush3.bf16.msra.mxu0 %v435_v1  ;;  %429 = vmatpush3.bf16.msra.mxu1 %v435_v1 }
   0x8   :  { %431 = vmatprep.subr.msk.bf16.mxu0 %vm151_vm1, %v436_v2  ;;  %432 = vmatprep.subr.msk.bf16.mxu1 %vm151_vm1, %v436_v2 }
   0xb   :  { %408 = vmatpush3.bf16.msra.mxu0 %v153_v5  ;;  %430 = vmatpush3.bf16.msra.mxu1 %v153_v5 }
   0xe   :  { %410 = vmatmul.mubr.msk.bf16.vlgmr.msra.gmra.mrb[0].mxu0 %vm126_vm0, %v438_v6  ;;  %418 = vmatmul.mubr.msk.bf16.vlgmr.msra.gmra.mrb[0].mxu1 %vm126_vm0, %v442_v7 }
   0xf   :  { %413 = vmatprep.mubr.msk.bf16.mxu0 %vm126_vm0, %v439_v8  ;;  %421 = vmatprep.mubr.msk.bf16.mxu1 %vm126_vm0, %v443_v9 }
  0x16   :  { %414 = vmatmul.mubr.msk.bf16.gmra.mrb[4].mxu0 %vm126_vm0, %v440_v10  ;;  %422 = vmatmul.mubr.msk.bf16.gmra.mrb[4].mxu1 %vm126_vm0, %v444_v11 }
  0xe1   :  { %v411_v12 = vpop.f32.mrb[0].mxu0  ;;  %v419_v13 = vpop.f32.mrb[0].mxu1 }
  0xe2   :  { %v189_v14 = vpop.f32.mrb[1].mxu0  ;;  %v221_v15 = vpop.f32.mrb[1].mxu1  ;;  %270 = vst [vmem:[%s563_s2 + $0x10] sm:$0xff] %v411_v12  ;;  %278 = vst [vmem:[%s563_s2 + $0x50] sm:$0xff] %v419_v13  ;;  %v326_v23 = vmul.f32 %v411_v12, %v411_v12  ;;  %v334_v55 = vmul.f32 %v419_v13, %v419_v13 }
  0xe3   :  { %v412_v16 = vpop.f32.mrb[2].mxu0  ;;  %v420_v17 = vpop.f32.mrb[2].mxu1  ;;  %268 = vst [vmem:[%s563_s2] sm:$0xff] %v189_v14  ;;  %276 = vst [vmem:[%s563_s2 + $0x40] sm:$0xff] %v221_v15  ;;  %v324_v20 = vmul.f32 %v189_v14, %v189_v14  ;;  %v332_v49 = vmul.f32 %v221_v15, %v221_v15 }
  0xe4   :  { %v192_v18 = vpop.f32.mrb[3].mxu0  ;;  %v224_v19 = vpop.f32.mrb[3].mxu1  ;;  %271 = vst [vmem:[%s563_s2 + $0x18] sm:$0xff] %v412_v16  ;;  %279 = vst [vmem:[%s563_s2 + $0x58] sm:$0xff] %v420_v17  ;;  %v327_v28 = vmul.f32 %v412_v16, %v412_v16  ;;  %v335_v58 = vmul.f32 %v420_v17, %v420_v17 }
  0xe5   :  { %269 = vst [vmem:[%s563_s2 + $0x8] sm:$0xff] %v192_v18  ;;  %v303_v21 = vadd.f32 %v192_v18, %v189_v14  ;;  %v325_v22 = vmul.f32 %v192_v18, %v192_v18  ;;  %277 = vst [vmem:[%s563_s2 + $0x48] sm:$0xff] %v224_v19  ;;  %v333_v54 = vmul.f32 %v224_v19, %v224_v19 }
  0xe7   :  { %v304_v24 = vadd.f32 %v411_v12, %v303_v21  ;;  %v340_v25 = vadd.f32 %v325_v22, %v324_v20 }
  0xe9   :  { %v415_v26 = vpop.f32.mrb[4].mxu0  ;;  %v423_v27 = vpop.f32.mrb[4].mxu1  ;;  %v341_v31 = vadd.f32 %v340_v25, %v326_v23  ;;  %v305_v32 = vadd.f32 %v412_v16, %v304_v24 }
  0xea   :  { %v205_v29 = vpop.f32.mrb[5].mxu0  ;;  %v237_v30 = vpop.f32.mrb[5].mxu1  ;;  %274 = vst [vmem:[%s563_s2 + $0x30] sm:$0xff] %v415_v26  ;;  %282 = vst [vmem:[%s563_s2 + $0x70] sm:$0xff] %v423_v27  ;;  %v330_v43 = vmul.f32 %v415_v26, %v415_v26  ;;  %v338_v3 = vmul.f32 %v423_v27, %v423_v27 }
  0xeb   :  { %v416_v33 = vpop.f32.mrb[6].mxu0  ;;  %v424_v34 = vpop.f32.mrb[6].mxu1  ;;  %272 = vst [vmem:[%s563_s2 + $0x20] sm:$0xff] %v205_v29  ;;  %v306_v37 = vadd.f32 %v305_v32, %v205_v29  ;;  %v328_v38 = vmul.f32 %v205_v29, %v205_v29  ;;  %v342_v39 = vadd.f32 %v341_v31, %v327_v28  ;;  %280 = vst [vmem:[%s563_s2 + $0x60] sm:$0xff] %v237_v30 }
  0xec   :  { %v208_v35 = vpop.f32.mrb[7].mxu0  ;;  %v240_v36 = vpop.f32.mrb[7].mxu1  ;;  %275 = vst [vmem:[%s563_s2 + $0x38] sm:$0xff] %v416_v33  ;;  %283 = vst [vmem:[%s563_s2 + $0x78] sm:$0xff] %v424_v34  ;;  %v331_v46 = vmul.f32 %v416_v33, %v416_v33  ;;  %v336_v61 = vmul.f32 %v237_v30, %v237_v30  ;;  %v339_v6 = vmul.f32 %v424_v34, %v424_v34 }
  0xed   :  { %v343_v40 = vadd.f32 %v342_v39, %v328_v38  ;;  %273 = vst [vmem:[%s563_s2 + $0x28] sm:$0xff] %v208_v35  ;;  %v307_v41 = vadd.f32 %v306_v37, %v208_v35  ;;  %v329_v42 = vmul.f32 %v208_v35, %v208_v35  ;;  %281 = vst [vmem:[%s563_s2 + $0x68] sm:$0xff] %v240_v36 }
  0xee   :  { %v337_v2 = vmul.f32 %v240_v36, %v240_v36 }
  0xef   :  { %v308_v44 = vadd.f32 %v415_v26, %v307_v41  ;;  %v344_v45 = vadd.f32 %v343_v40, %v329_v42 }
  0xf1   :  { %v345_v47 = vadd.f32 %v344_v45, %v330_v43  ;;  %v309_v48 = vadd.f32 %v416_v33, %v308_v44 }
  0xf3   :  { %v310_v50 = vadd.f32 %v309_v48, %v221_v15  ;;  %v346_v51 = vadd.f32 %v345_v47, %v331_v46 }
  0xf5   :  { %v347_v52 = vadd.f32 %v346_v51, %v332_v49  ;;  %v311_v53 = vadd.f32 %v310_v50, %v224_v19 }
  0xf7   :  { %v312_v56 = vadd.f32 %v419_v13, %v311_v53  ;;  %v348_v57 = vadd.f32 %v347_v52, %v333_v54 }
  0xf9   :  { %v349_v59 = vadd.f32 %v348_v57, %v334_v55  ;;  %v313_v60 = vadd.f32 %v420_v17, %v312_v56 }
  0xfb   :  { %v314_v62 = vadd.f32 %v313_v60, %v237_v30  ;;  %v350_v63 = vadd.f32 %v349_v59, %v335_v58 }
  0xfd   :  { %v351_v0 = vadd.f32 %v350_v63, %v336_v61  ;;  %v315_v1 = vadd.f32 %v314_v62, %v240_v36 }
  0xff   :  { %v316_v4 = vadd.f32 %v423_v27, %v315_v1  ;;  %v352_v5 = vadd.f32 %v351_v0, %v337_v2 }
 0x101   :  { %v317_v7 = vadd.f32 %v424_v34, %v316_v4  ;;  %v353_v8 = vadd.f32 %v352_v5, %v338_v3 }
 0x103   :  { %v318_v9 = vrot.slane %v317_v7, 4  ;;  %v354_v10 = vadd.f32 %v353_v8, %v339_v6 }
 0x105   :  { %v319_v11 = vadd.f32 %v318_v9, %v317_v7  ;;  %v355_v12 = vrot.slane %v354_v10, 4 }
 0x107   :  { %v320_v13 = vrot.slane %v319_v11, 2  ;;  %v356_v14 = vadd.f32 %v355_v12, %v354_v10 }
 0x109   :  { %v321_v15 = vadd.f32 %v320_v13, %v319_v11  ;;  %v357_v16 = vrot.slane %v356_v14, 2 }
 0x10b   :  { %v322_v17 = vrot.slane %v321_v15, 1  ;;  %v358_v18 = vadd.f32 %v357_v16, %v356_v14 }
 0x10d   :  { %v359_v19 = vrot.slane %v358_v18, 1  ;;  %v323_v20 = vadd.f32 %v322_v17, %v321_v15 }
 0x10f   :  { %v360_v21 = vadd.f32 %v359_v19, %v358_v18 }
 0x111   :  { %v362_v22 = vsel %vm361_vm2, %v323_v20, %v360_v21 }
 0x112   :  { %v363_v23 = vsel %vm151_vm1, %v362_v22, 0.0 }
 0x113   :  { %364 = vst [vmem:[%s564_s3] sm:$0xff] %v363_v23 }

// kernel: _lambda_.10
= control target key start
LH: loop header
LB: loop body
LE: loop exit
PB: predicated region body
PF: predicated region fallthrough
CT: control target
= control target key end

     0   :  { %vm142_vm0 = vcmask 588800   ;;  %vm167_vm1 = vcmask 1043456   ;;  %vm377_vm2 = vcmask 1040384   ;;  %vm379_vm3 = vcmask 1041408   ;;  %s594_s1 = inlined_call_operand.vmem [shape: bf16[72,128], index: 1, kind: input, shape index: {}]   ;;  %s595_s0 = inlined_call_operand.vmem [shape: bf16[128,72], index: 0, kind: input, shape index: {}]   ;;  %s596_s2 = inlined_call_operand.vmem [shape: f32[128,128], index: 2, kind: output, shape index: {0}]   ;;  %s597_s3 = inlined_call_operand.vmem [shape: f32[8,128], index: 3, kind: output, shape index: {1}]  }
   0x1   :  { %v463_v0 = vld [vmem:[%s594_s1] sm:$0xff]   ;;  %v464_v1 = vld [vmem:[%s594_s1 + $0x8] sm:$0xff]   ;;  %v465_v2 = vld [vmem:[%s594_s1 + $0x10] sm:$0xff]  }
   0x2   :  { %424 = vmatprep.subr.bf16.mxu0 %v463_v0  ;;  %450 = vmatprep.subr.bf16.mxu1 %v463_v0  ;;  %v468_v3 = vld [vmem:[%s595_s0] sm:$0xff]   ;;  %v466_v4 = vld [vmem:[%s594_s1 + $0x18] sm:$0xff]   ;;  %v469_v8 = vld [vmem:[%s595_s0 + $0x8] sm:$0xff]  }
   0x3   :  { %425 = vmatpush3.bf16.msra.mxu0 %v463_v0  ;;  %455 = vmatpush3.bf16.msra.mxu1 %v463_v0  ;;  %v472_v5 = vld [vmem:[%s595_s0 + $0x20] sm:$0xff]   ;;  %v473_v9 = vld [vmem:[%s595_s0 + $0x28] sm:$0xff]   ;;  %v470_v10 = vld [vmem:[%s595_s0 + $0x10] sm:$0xff]  }
   0x4   :  { %426 = vmatprep.subr.bf16.mxu0 %v464_v1  ;;  %451 = vmatprep.subr.bf16.mxu1 %v464_v1  ;;  %v467_v6 = vld [vmem:[%s594_s1 + $0x20] ss:$0 sps:$4 sm:$0xff]   ;;  %v474_v11 = vld [vmem:[%s595_s0 + $0x30] sm:$0xff]   ;;  %v471_v12 = vld [vmem:[%s595_s0 + $0x18] sm:$0xff]  }
   0x5   :  { %434 = vmatprep.mubr.msk.bf16.mxu0 %vm142_vm0, %v468_v3  ;;  %442 = vmatprep.mubr.msk.bf16.mxu1 %vm142_vm0, %v472_v5  ;;  %v169_v7 = vsel %vm167_vm1, %v467_v6, 0  ;;  %v475_v13 = vld [vmem:[%s595_s0 + $0x38] sm:$0xff]  }
   0x7   :  { %427 = vmatpush3.bf16.msra.mxu0 %v464_v1  ;;  %456 = vmatpush3.bf16.msra.mxu1 %v464_v1 }
   0x8   :  { %428 = vmatprep.subr.bf16.mxu0 %v465_v2  ;;  %452 = vmatprep.subr.bf16.mxu1 %v465_v2 }
   0xb   :  { %429 = vmatpush3.bf16.msra.mxu0 %v465_v2  ;;  %457 = vmatpush3.bf16.msra.mxu1 %v465_v2 }
   0xc   :  { %430 = vmatprep.subr.bf16.mxu0 %v466_v4  ;;  %453 = vmatprep.subr.bf16.mxu1 %v466_v4 }
   0xf   :  { %431 = vmatpush3.bf16.msra.mxu0 %v466_v4  ;;  %458 = vmatpush3.bf16.msra.mxu1 %v466_v4 }
  0x10   :  { %460 = vmatprep.subr.msk.bf16.mxu0 %vm167_vm1, %v467_v6  ;;  %461 = vmatprep.subr.msk.bf16.mxu1 %vm167_vm1, %v467_v6 }
  0x13   :  { %433 = vmatpush3.bf16.msra.mxu0 %v169_v7  ;;  %459 = vmatpush3.bf16.msra.mxu1 %v169_v7 }
  0x16   :  { %435 = vmatmul.mubr.msk.bf16.vlgmr.msra.gmra.mrb[0].mxu0 %vm142_vm0, %v469_v8  ;;  %443 = vmatmul.mubr.msk.bf16.vlgmr.msra.gmra.mrb[0].mxu1 %vm142_vm0, %v473_v9 }
  0x17   :  { %438 = vmatprep.mubr.msk.bf16.mxu0 %vm142_vm0, %v470_v10  ;;  %446 = vmatprep.mubr.msk.bf16.mxu1 %vm142_vm0, %v474_v11 }
  0x1e   :  { %439 = vmatmul.mubr.msk.bf16.gmra.mrb[4].mxu0 %vm142_vm0, %v471_v12  ;;  %447 = vmatmul.mubr.msk.bf16.gmra.mrb[4].mxu1 %vm142_vm0, %v475_v13 }
  0xe9   :  { %v436_v14 = vpop.f32.mrb[0].mxu0  ;;  %v444_v15 = vpop.f32.mrb[0].mxu1 }
  0xea   :  { %v205_v16 = vpop.f32.mrb[1].mxu0  ;;  %v237_v17 = vpop.f32.mrb[1].mxu1  ;;  %286 = vst [vmem:[%s596_s2 + $0x10] sm:$0xff] %v436_v14  ;;  %294 = vst [vmem:[%s596_s2 + $0x50] sm:$0xff] %v444_v15  ;;  %v342_v25 = vmul.f32 %v436_v14, %v436_v14  ;;  %v350_v57 = vmul.f32 %v444_v15, %v444_v15 }
  0xeb   :  { %v437_v18 = vpop.f32.mrb[2].mxu0  ;;  %v445_v19 = vpop.f32.mrb[2].mxu1  ;;  %284 = vst [vmem:[%s596_s2] sm:$0xff] %v205_v16  ;;  %292 = vst [vmem:[%s596_s2 + $0x40] sm:$0xff] %v237_v17  ;;  %v340_v22 = vmul.f32 %v205_v16, %v205_v16  ;;  %v348_v51 = vmul.f32 %v237_v17, %v237_v17 }
  0xec   :  { %v208_v20 = vpop.f32.mrb[3].mxu0  ;;  %v240_v21 = vpop.f32.mrb[3].mxu1  ;;  %287 = vst [vmem:[%s596_s2 + $0x18] sm:$0xff] %v437_v18  ;;  %295 = vst [vmem:[%s596_s2 + $0x58] sm:$0xff] %v445_v19  ;;  %v343_v30 = vmul.f32 %v437_v18, %v437_v18  ;;  %v351_v60 = vmul.f32 %v445_v19, %v445_v19 }
  0xed   :  { %285 = vst [vmem:[%s596_s2 + $0x8] sm:$0xff] %v208_v20  ;;  %v319_v23 = vadd.f32 %v208_v20, %v205_v16  ;;  %v341_v24 = vmul.f32 %v208_v20, %v208_v20  ;;  %293 = vst [vmem:[%s596_s2 + $0x48] sm:$0xff] %v240_v21  ;;  %v349_v56 = vmul.f32 %v240_v21, %v240_v21 }
  0xef   :  { %v320_v26 = vadd.f32 %v436_v14, %v319_v23  ;;  %v356_v27 = vadd.f32 %v341_v24, %v340_v22 }
  0xf1   :  { %v440_v28 = vpop.f32.mrb[4].mxu0  ;;  %v448_v29 = vpop.f32.mrb[4].mxu1  ;;  %v357_v33 = vadd.f32 %v356_v27, %v342_v25  ;;  %v321_v34 = vadd.f32 %v437_v18, %v320_v26 }
  0xf2   :  { %v221_v31 = vpop.f32.mrb[5].mxu0  ;;  %v253_v32 = vpop.f32.mrb[5].mxu1  ;;  %290 = vst [vmem:[%s596_s2 + $0x30] sm:$0xff] %v440_v28  ;;  %298 = vst [vmem:[%s596_s2 + $0x70] sm:$0xff] %v448_v29  ;;  %v346_v45 = vmul.f32 %v440_v28, %v440_v28  ;;  %v354_v5 = vmul.f32 %v448_v29, %v448_v29 }
  0xf3   :  { %v441_v35 = vpop.f32.mrb[6].mxu0  ;;  %v449_v36 = vpop.f32.mrb[6].mxu1  ;;  %288 = vst [vmem:[%s596_s2 + $0x20] sm:$0xff] %v221_v31  ;;  %v322_v39 = vadd.f32 %v321_v34, %v221_v31  ;;  %v344_v40 = vmul.f32 %v221_v31, %v221_v31  ;;  %v358_v41 = vadd.f32 %v357_v33, %v343_v30  ;;  %296 = vst [vmem:[%s596_s2 + $0x60] sm:$0xff] %v253_v32 }
  0xf4   :  { %v224_v37 = vpop.f32.mrb[7].mxu0  ;;  %v256_v38 = vpop.f32.mrb[7].mxu1  ;;  %291 = vst [vmem:[%s596_s2 + $0x38] sm:$0xff] %v441_v35  ;;  %299 = vst [vmem:[%s596_s2 + $0x78] sm:$0xff] %v449_v36  ;;  %v347_v48 = vmul.f32 %v441_v35, %v441_v35  ;;  %v352_v63 = vmul.f32 %v253_v32, %v253_v32  ;;  %v355_v8 = vmul.f32 %v449_v36, %v449_v36 }
  0xf5   :  { %v359_v42 = vadd.f32 %v358_v41, %v344_v40  ;;  %289 = vst [vmem:[%s596_s2 + $0x28] sm:$0xff] %v224_v37  ;;  %v323_v43 = vadd.f32 %v322_v39, %v224_v37  ;;  %v345_v44 = vmul.f32 %v224_v37, %v224_v37  ;;  %297 = vst [vmem:[%s596_s2 + $0x68] sm:$0xff] %v256_v38 }
  0xf6   :  { %v353_v4 = vmul.f32 %v256_v38, %v256_v38 }
  0xf7   :  { %v324_v46 = vadd.f32 %v440_v28, %v323_v43  ;;  %v360_v47 = vadd.f32 %v359_v42, %v345_v44 }
  0xf9   :  { %v361_v49 = vadd.f32 %v360_v47, %v346_v45  ;;  %v325_v50 = vadd.f32 %v441_v35, %v324_v46 }
  0xfb   :  { %v326_v52 = vadd.f32 %v325_v50, %v237_v17  ;;  %v362_v53 = vadd.f32 %v361_v49, %v347_v48 }
  0xfd   :  { %v363_v54 = vadd.f32 %v362_v53, %v348_v51  ;;  %v327_v55 = vadd.f32 %v326_v52, %v240_v21 }
  0xff   :  { %v328_v58 = vadd.f32 %v444_v15, %v327_v55  ;;  %v364_v59 = vadd.f32 %v363_v54, %v349_v56 }
 0x101   :  { %v365_v61 = vadd.f32 %v364_v59, %v350_v57  ;;  %v329_v62 = vadd.f32 %v445_v19, %v328_v58 }
 0x103   :  { %v330_v0 = vadd.f32 %v329_v62, %v253_v32  ;;  %v366_v1 = vadd.f32 %v365_v61, %v351_v60 }
 0x105   :  { %v367_v2 = vadd.f32 %v366_v1, %v352_v63  ;;  %v331_v3 = vadd.f32 %v330_v0, %v256_v38 }
 0x107   :  { %v332_v6 = vadd.f32 %v448_v29, %v331_v3  ;;  %v368_v7 = vadd.f32 %v367_v2, %v353_v4 }
 0x109   :  { %v333_v9 = vadd.f32 %v449_v36, %v332_v6  ;;  %v369_v10 = vadd.f32 %v368_v7, %v354_v5 }
 0x10b   :  { %v334_v11 = vrot.slane %v333_v9, 4  ;;  %v370_v12 = vadd.f32 %v369_v10, %v355_v8 }
 0x10d   :  { %v335_v13 = vadd.f32 %v334_v11, %v333_v9  ;;  %v371_v14 = vrot.slane %v370_v12, 4 }
 0x10f   :  { %v336_v15 = vrot.slane %v335_v13, 2  ;;  %v372_v16 = vadd.f32 %v371_v14, %v370_v12 }
 0x111   :  { %v337_v17 = vadd.f32 %v336_v15, %v335_v13  ;;  %v373_v18 = vrot.slane %v372_v16, 2 }
 0x113   :  { %v338_v19 = vrot.slane %v337_v17, 1  ;;  %v374_v20 = vadd.f32 %v373_v18, %v372_v16 }
 0x115   :  { %v375_v21 = vrot.slane %v374_v20, 1  ;;  %v339_v22 = vadd.f32 %v338_v19, %v337_v17 }
 0x117   :  { %v376_v23 = vadd.f32 %v375_v21, %v374_v20 }
 0x119   :  { %v378_v24 = vsel %vm377_vm2, %v339_v22, %v376_v23 }
 0x11a   :  { %v380_v25 = vsel %vm379_vm3, %v378_v24, 0.0 }
 0x11b   :  { %381 = vst [vmem:[%s597_s3] sm:$0xff] %v380_v25 }

// kernel: _lambda_.7
= control target key start
LH: loop header
LB: loop body
LE: loop exit
PB: predicated region body
PF: predicated region fallthrough
CT: control target
= control target key end

     0   :  { %s220_s0 = inlined_call_operand.vmem [shape: f32[128,128], index: 0, kind: input, shape index: {}]   ;;  %s221_s1 = inlined_call_operand.vmem [shape: f32[1,128], index: 1, kind: input, shape index: {}]   ;;  %s222_s2 = inlined_call_operand.vmem [shape: f32[1,128], index: 2, kind: input, shape index: {}]   ;;  %s223_s3 = inlined_call_operand.vmem [shape: f32[128,128], index: 3, kind: output, shape index: {}]  }
   0x1   :  { %v14_v0 = vld [vmem:[%s220_s0] sm:$0xff]  ;;  %v15_v4 = vld [vmem:[%s220_s0 + $0x8] sm:$0xff]  ;;  %v16_v5 = vld [vmem:[%s220_s0 + $0x10] sm:$0xff] }
   0x2   :  { %v96_v1 = vld [vmem:[%s221_s1] ss:$0 sm:$0xff]  ;;  %v17_v6 = vld [vmem:[%s220_s0 + $0x18] sm:$0xff]  ;;  %v19_v11 = vld [vmem:[%s220_s0 + $0x28] sm:$0xff] }
   0x3   :  { %v97_v2 = vld [vmem:[%s222_s2] ss:$0 sm:$0xff]  ;;  %v37_v3 = vmul.f32 %v96_v1, %v14_v0  ;;  %v38_v7 = vmul.f32 %v96_v1, %v15_v4  ;;  %v39_v8 = vmul.f32 %v96_v1, %v16_v5  ;;  %v40_v9 = vmul.f32 %v96_v1, %v17_v6  ;;  %v20_v12 = vld [vmem:[%s220_s0 + $0x30] sm:$0xff]  ;;  %v21_v17 = vld [vmem:[%s220_s0 + $0x38] sm:$0xff] }
   0x4   :  { %v18_v10 = vld [vmem:[%s220_s0 + $0x20] sm:$0xff]  ;;  %v42_v15 = vmul.f32 %v96_v1, %v19_v11  ;;  %v43_v16 = vmul.f32 %v96_v1, %v20_v12  ;;  %v23_v19 = vld [vmem:[%s220_s0 + $0x48] sm:$0xff]  ;;  %v44_v23 = vmul.f32 %v96_v1, %v21_v17  ;;  %v24_v24 = vld [vmem:[%s220_s0 + $0x50] sm:$0xff] }
   0x5   :  { %v60_v13 = vadd.f32 %v97_v2, %v37_v3  ;;  %v41_v14 = vmul.f32 %v96_v1, %v18_v10  ;;  %v22_v18 = vld [vmem:[%s220_s0 + $0x40] sm:$0xff]  ;;  %v61_v20 = vadd.f32 %v97_v2, %v38_v7  ;;  %v62_v21 = vadd.f32 %v97_v2, %v39_v8  ;;  %v25_v25 = vld [vmem:[%s220_s0 + $0x58] sm:$0xff]  ;;  %v27_v31 = vld [vmem:[%s220_s0 + $0x68] sm:$0xff] }
   0x6   :  { %v63_v22 = vadd.f32 %v97_v2, %v40_v9  ;;  %v26_v26 = vld [vmem:[%s220_s0 + $0x60] sm:$0xff]  ;;  %v65_v28 = vadd.f32 %v97_v2, %v42_v15  ;;  %v66_v29 = vadd.f32 %v97_v2, %v43_v16  ;;  %v45_v30 = vmul.f32 %v96_v1, %v22_v18  ;;  %v28_v32 = vld [vmem:[%s220_s0 + $0x70] sm:$0xff]  ;;  %v29_v33 = vld [vmem:[%s220_s0 + $0x78] sm:$0xff] }
   0x7   :  { %76 = vst [vmem:[%s223_s3] sm:$0xff] %v60_v13  ;;  %v64_v27 = vadd.f32 %v97_v2, %v41_v14  ;;  %77 = vst [vmem:[%s223_s3 + $0x8] sm:$0xff] %v61_v20  ;;  %v67_v34 = vadd.f32 %v97_v2, %v44_v23  ;;  %v46_v35 = vmul.f32 %v96_v1, %v23_v19 }
   0x8   :  { %78 = vst [vmem:[%s223_s3 + $0x10] sm:$0xff] %v62_v21  ;;  %79 = vst [vmem:[%s223_s3 + $0x18] sm:$0xff] %v63_v22  ;;  %v47_v36 = vmul.f32 %v96_v1, %v24_v24  ;;  %v48_v37 = vmul.f32 %v96_v1, %v25_v25  ;;  %v68_v38 = vadd.f32 %v97_v2, %v45_v30 }
   0x9   :  { %80 = vst [vmem:[%s223_s3 + $0x20] sm:$0xff] %v64_v27  ;;  %81 = vst [vmem:[%s223_s3 + $0x28] sm:$0xff] %v65_v28  ;;  %v49_v39 = vmul.f32 %v96_v1, %v26_v26  ;;  %v50_v40 = vmul.f32 %v96_v1, %v27_v31  ;;  %v51_v41 = vmul.f32 %v96_v1, %v28_v32 }
   0xa   :  { %82 = vst [vmem:[%s223_s3 + $0x30] sm:$0xff] %v66_v29  ;;  %83 = vst [vmem:[%s223_s3 + $0x38] sm:$0xff] %v67_v34  ;;  %v69_v42 = vadd.f32 %v97_v2, %v46_v35  ;;  %v70_v43 = vadd.f32 %v97_v2, %v47_v36  ;;  %v71_v44 = vadd.f32 %v97_v2, %v48_v37 }
   0xb   :  { %v52_v45 = vmul.f32 %v96_v1, %v29_v33  ;;  %84 = vst [vmem:[%s223_s3 + $0x40] sm:$0xff] %v68_v38  ;;  %v72_v46 = vadd.f32 %v97_v2, %v49_v39  ;;  %v73_v47 = vadd.f32 %v97_v2, %v50_v40  ;;  %v74_v48 = vadd.f32 %v97_v2, %v51_v41 }
   0xc   :  { %85 = vst [vmem:[%s223_s3 + $0x48] sm:$0xff] %v69_v42  ;;  %86 = vst [vmem:[%s223_s3 + $0x50] sm:$0xff] %v70_v43 }
   0xd   :  { %87 = vst [vmem:[%s223_s3 + $0x58] sm:$0xff] %v71_v44  ;;  %v75_v49 = vadd.f32 %v97_v2, %v52_v45  ;;  %88 = vst [vmem:[%s223_s3 + $0x60] sm:$0xff] %v72_v46 }
   0xe   :  { %89 = vst [vmem:[%s223_s3 + $0x68] sm:$0xff] %v73_v47  ;;  %90 = vst [vmem:[%s223_s3 + $0x70] sm:$0xff] %v74_v48 }
   0xf   :  { %91 = vst [vmem:[%s223_s3 + $0x78] sm:$0xff] %v75_v49 }

// kernel: _lambda_.6
= control target key start
LH: loop header
LB: loop body
LE: loop exit
PB: predicated region body
PF: predicated region fallthrough
CT: control target
= control target key end

     0   :  { %vm132_vm0 = vcmask 1041408   ;;  %vm107_vm1 = vcmask 31744   ;;  %vm342_vm2 = vcmask 1040384   ;;  %s520_s1 = inlined_call_operand.vmem [shape: bf16[4,128], index: 1, kind: input, shape index: {}]   ;;  %s521_s0 = inlined_call_operand.vmem [shape: bf16[128,4], index: 0, kind: input, shape index: {}]   ;;  %s522_s2 = inlined_call_operand.vmem [shape: f32[128,128], index: 2, kind: output, shape index: {0}]   ;;  %s523_s3 = inlined_call_operand.vmem [shape: f32[8,128], index: 3, kind: output, shape index: {1}]  }
   0x1   :  { %v66_v0 = vld [vmem:[%s520_s1] sm:$0x3]  ;;  %v403_v3 = vld [vmem:[%s521_s0 + $0x8] sm:$0xff]   ;;  %v404_v4 = vld [vmem:[%s521_s0 + $0x10] sm:$0xff]  }
   0x2   :  { %399 = vmatprep.subr.msk.bf16.mxu0 %vm132_vm0, %v66_v0  ;;  %v134_v1 = vsel %vm132_vm0, %v66_v0, 0  ;;  %v402_v2 = vld [vmem:[%s521_s0] sm:$0xff]   ;;  %400 = vmatprep.subr.msk.bf16.mxu1 %vm132_vm0, %v66_v0  ;;  %v407_v6 = vld [vmem:[%s521_s0 + $0x28] sm:$0xff]   ;;  %v408_v7 = vld [vmem:[%s521_s0 + $0x30] sm:$0xff]  }
   0x3   :  { %380 = vmatpush3.bf16.msra.mxu0 %v134_v1  ;;  %398 = vmatpush3.bf16.msra.mxu1 %v134_v1  ;;  %v406_v5 = vld [vmem:[%s521_s0 + $0x20] sm:$0xff]   ;;  %v405_v8 = vld [vmem:[%s521_s0 + $0x18] sm:$0xff]  }
   0x4   :  { %381 = vmatprep.mubr.msk.bf16.mxu0 %vm107_vm1, %v402_v2  ;;  %389 = vmatprep.mubr.msk.bf16.mxu1 %vm107_vm1, %v406_v5  ;;  %v409_v9 = vld [vmem:[%s521_s0 + $0x38] sm:$0xff]  }
   0x6   :  { %382 = vmatmul.mubr.msk.bf16.vlgmr.msra.gmra.mrb[0].mxu0 %vm107_vm1, %v403_v3  ;;  %390 = vmatmul.mubr.msk.bf16.vlgmr.msra.gmra.mrb[0].mxu1 %vm107_vm1, %v407_v6 }
   0x7   :  { %385 = vmatprep.mubr.msk.bf16.mxu0 %vm107_vm1, %v404_v4  ;;  %393 = vmatprep.mubr.msk.bf16.mxu1 %vm107_vm1, %v408_v7 }
   0xe   :  { %386 = vmatmul.mubr.msk.bf16.gmra.mrb[4].mxu0 %vm107_vm1, %v405_v8  ;;  %394 = vmatmul.mubr.msk.bf16.gmra.mrb[4].mxu1 %vm107_vm1, %v409_v9 }
  0xd9   :  { %v383_v10 = vpop.f32.mrb[0].mxu0  ;;  %v391_v14 = vpop.f32.mrb[0].mxu1 }
  0xda   :  { %v170_v11 = vpop.f32.mrb[1].mxu0  ;;  %251 = vst [vmem:[%s522_s2 + $0x10] sm:$0xff] %v383_v10  ;;  %v202_v15 = vpop.f32.mrb[1].mxu1  ;;  %259 = vst [vmem:[%s522_s2 + $0x50] sm:$0xff] %v391_v14  ;;  %v307_v21 = vmul.f32 %v383_v10, %v383_v10  ;;  %v315_v53 = vmul.f32 %v391_v14, %v391_v14 }
  0xdb   :  { %v384_v12 = vpop.f32.mrb[2].mxu0  ;;  %249 = vst [vmem:[%s522_s2] sm:$0xff] %v170_v11  ;;  %v392_v16 = vpop.f32.mrb[2].mxu1  ;;  %v305_v17 = vmul.f32 %v170_v11, %v170_v11  ;;  %257 = vst [vmem:[%s522_s2 + $0x40] sm:$0xff] %v202_v15  ;;  %v313_v47 = vmul.f32 %v202_v15, %v202_v15 }
  0xdc   :  { %v173_v13 = vpop.f32.mrb[3].mxu0  ;;  %252 = vst [vmem:[%s522_s2 + $0x18] sm:$0xff] %v384_v12  ;;  %v205_v20 = vpop.f32.mrb[3].mxu1  ;;  %260 = vst [vmem:[%s522_s2 + $0x58] sm:$0xff] %v392_v16  ;;  %v308_v26 = vmul.f32 %v384_v12, %v384_v12  ;;  %v316_v56 = vmul.f32 %v392_v16, %v392_v16 }
  0xdd   :  { %250 = vst [vmem:[%s522_s2 + $0x8] sm:$0xff] %v173_v13  ;;  %v284_v18 = vadd.f32 %v173_v13, %v170_v11  ;;  %v306_v19 = vmul.f32 %v173_v13, %v173_v13  ;;  %258 = vst [vmem:[%s522_s2 + $0x48] sm:$0xff] %v205_v20  ;;  %v314_v52 = vmul.f32 %v205_v20, %v205_v20 }
  0xdf   :  { %v285_v22 = vadd.f32 %v383_v10, %v284_v18  ;;  %v321_v23 = vadd.f32 %v306_v19, %v305_v17 }
  0xe1   :  { %v387_v24 = vpop.f32.mrb[4].mxu0  ;;  %v322_v27 = vadd.f32 %v321_v23, %v307_v21  ;;  %v286_v28 = vadd.f32 %v384_v12, %v285_v22  ;;  %v395_v31 = vpop.f32.mrb[4].mxu1 }
  0xe2   :  { %v186_v25 = vpop.f32.mrb[5].mxu0  ;;  %255 = vst [vmem:[%s522_s2 + $0x30] sm:$0xff] %v387_v24  ;;  %v218_v35 = vpop.f32.mrb[5].mxu1  ;;  %263 = vst [vmem:[%s522_s2 + $0x70] sm:$0xff] %v395_v31  ;;  %v311_v41 = vmul.f32 %v387_v24, %v387_v24  ;;  %v319_v1 = vmul.f32 %v395_v31, %v395_v31 }
  0xe3   :  { %v388_v29 = vpop.f32.mrb[6].mxu0  ;;  %253 = vst [vmem:[%s522_s2 + $0x20] sm:$0xff] %v186_v25  ;;  %v287_v32 = vadd.f32 %v286_v28, %v186_v25  ;;  %v309_v33 = vmul.f32 %v186_v25, %v186_v25  ;;  %v323_v34 = vadd.f32 %v322_v27, %v308_v26  ;;  %v396_v36 = vpop.f32.mrb[6].mxu1  ;;  %261 = vst [vmem:[%s522_s2 + $0x60] sm:$0xff] %v218_v35 }
  0xe4   :  { %v189_v30 = vpop.f32.mrb[7].mxu0  ;;  %256 = vst [vmem:[%s522_s2 + $0x38] sm:$0xff] %v388_v29  ;;  %v221_v40 = vpop.f32.mrb[7].mxu1  ;;  %264 = vst [vmem:[%s522_s2 + $0x78] sm:$0xff] %v396_v36  ;;  %v312_v44 = vmul.f32 %v388_v29, %v388_v29  ;;  %v317_v59 = vmul.f32 %v218_v35, %v218_v35  ;;  %v320_v4 = vmul.f32 %v396_v36, %v396_v36 }
  0xe5   :  { %v324_v37 = vadd.f32 %v323_v34, %v309_v33  ;;  %254 = vst [vmem:[%s522_s2 + $0x28] sm:$0xff] %v189_v30  ;;  %v288_v38 = vadd.f32 %v287_v32, %v189_v30  ;;  %v310_v39 = vmul.f32 %v189_v30, %v189_v30  ;;  %262 = vst [vmem:[%s522_s2 + $0x68] sm:$0xff] %v221_v40 }
  0xe6   :  { %v318_v0 = vmul.f32 %v221_v40, %v221_v40 }
  0xe7   :  { %v289_v42 = vadd.f32 %v387_v24, %v288_v38  ;;  %v325_v43 = vadd.f32 %v324_v37, %v310_v39 }
  0xe9   :  { %v326_v45 = vadd.f32 %v325_v43, %v311_v41  ;;  %v290_v46 = vadd.f32 %v388_v29, %v289_v42 }
  0xeb   :  { %v291_v48 = vadd.f32 %v290_v46, %v202_v15  ;;  %v327_v49 = vadd.f32 %v326_v45, %v312_v44 }
  0xed   :  { %v328_v50 = vadd.f32 %v327_v49, %v313_v47  ;;  %v292_v51 = vadd.f32 %v291_v48, %v205_v20 }
  0xef   :  { %v293_v54 = vadd.f32 %v391_v14, %v292_v51  ;;  %v329_v55 = vadd.f32 %v328_v50, %v314_v52 }
  0xf1   :  { %v330_v57 = vadd.f32 %v329_v55, %v315_v53  ;;  %v294_v58 = vadd.f32 %v392_v16, %v293_v54 }
  0xf3   :  { %v295_v60 = vadd.f32 %v294_v58, %v218_v35  ;;  %v331_v61 = vadd.f32 %v330_v57, %v316_v56 }
  0xf5   :  { %v332_v62 = vadd.f32 %v331_v61, %v317_v59  ;;  %v296_v63 = vadd.f32 %v295_v60, %v221_v40 }
  0xf7   :  { %v297_v2 = vadd.f32 %v395_v31, %v296_v63  ;;  %v333_v3 = vadd.f32 %v332_v62, %v318_v0 }
  0xf9   :  { %v298_v5 = vadd.f32 %v396_v36, %v297_v2  ;;  %v334_v6 = vadd.f32 %v333_v3, %v319_v1 }
  0xfb   :  { %v299_v7 = vrot.slane %v298_v5, 4  ;;  %v335_v8 = vadd.f32 %v334_v6, %v320_v4 }
  0xfd   :  { %v300_v9 = vadd.f32 %v299_v7, %v298_v5  ;;  %v336_v10 = vrot.slane %v335_v8, 4 }
  0xff   :  { %v301_v11 = vrot.slane %v300_v9, 2  ;;  %v337_v12 = vadd.f32 %v336_v10, %v335_v8 }
 0x101   :  { %v302_v13 = vadd.f32 %v301_v11, %v300_v9  ;;  %v338_v14 = vrot.slane %v337_v12, 2 }
 0x103   :  { %v303_v15 = vrot.slane %v302_v13, 1  ;;  %v339_v16 = vadd.f32 %v338_v14, %v337_v12 }
 0x105   :  { %v340_v17 = vrot.slane %v339_v16, 1  ;;  %v304_v18 = vadd.f32 %v303_v15, %v302_v13 }
 0x107   :  { %v341_v19 = vadd.f32 %v340_v17, %v339_v16 }
 0x109   :  { %v343_v20 = vsel %vm342_vm2, %v304_v18, %v341_v19 }
 0x10a   :  { %v344_v21 = vsel %vm132_vm0, %v343_v20, 0.0 }
 0x10b   :  { %345 = vst [vmem:[%s523_s3] sm:$0xff] %v344_v21 }

// kernel: _lambda_.11
= control target key start
LH: loop header
LB: loop body
LE: loop exit
PB: predicated region body
PF: predicated region fallthrough
CT: control target
= control target key end

     0   :  { %s360_s0 = inlined_call_operand.vmem [shape: f32[128,128], index: 0, kind: input, shape index: {}]   ;;  %s361_s1 = inlined_call_operand.vmem [shape: f32[1,128], index: 1, kind: input, shape index: {}]   ;;  %s362_s2 = inlined_call_operand.vmem [shape: f32[1,128], index: 2, kind: input, shape index: {}]   ;;  %s363_s3 = inlined_call_operand.vmem [shape: f32[128,128], index: 3, kind: input, shape index: {}]   ;;  %s364_s4 = inlined_call_operand.vmem [shape: f32[128,128], index: 4, kind: output, shape index: {}]  }
   0x1   :  { %v17_v0 = vld [vmem:[%s360_s0] sm:$0xff]  ;;  %v18_v4 = vld [vmem:[%s360_s0 + $0x8] sm:$0xff]  ;;  %v19_v7 = vld [vmem:[%s360_s0 + $0x10] sm:$0xff] }
   0x2   :  { %v180_v1 = vld [vmem:[%s361_s1] ss:$0 sm:$0xff]  ;;  %v20_v8 = vld [vmem:[%s360_s0 + $0x18] sm:$0xff]  ;;  %v80_v10 = vld [vmem:[%s363_s3 + $0x8] sm:$0xff] }
   0x3   :  { %v185_v2 = vld [vmem:[%s362_s2] ss:$0 sm:$0xff]  ;;  %v40_v3 = vmul.f32 %v180_v1, %v17_v0  ;;  %v41_v6 = vmul.f32 %v180_v1, %v18_v4  ;;  %v42_v11 = vmul.f32 %v180_v1, %v19_v7  ;;  %v81_v12 = vld [vmem:[%s363_s3 + $0x10] sm:$0xff]  ;;  %v43_v13 = vmul.f32 %v180_v1, %v20_v8  ;;  %v82_v16 = vld [vmem:[%s363_s3 + $0x18] sm:$0xff] }
   0x4   :  { %v79_v5 = vld [vmem:[%s363_s3] sm:$0xff]  ;;  %v22_v18 = vld [vmem:[%s360_s0 + $0x28] sm:$0xff]  ;;  %v23_v19 = vld [vmem:[%s360_s0 + $0x30] sm:$0xff] }
   0x5   :  { %v63_v9 = vadd.f32 %v185_v2, %v40_v3  ;;  %v21_v14 = vld [vmem:[%s360_s0 + $0x20] sm:$0xff]  ;;  %v64_v15 = vadd.f32 %v185_v2, %v41_v6  ;;  %v65_v21 = vadd.f32 %v185_v2, %v42_v11  ;;  %v66_v22 = vadd.f32 %v185_v2, %v43_v13  ;;  %v24_v25 = vld [vmem:[%s360_s0 + $0x38] sm:$0xff]  ;;  %v84_v28 = vld [vmem:[%s363_s3 + $0x28] sm:$0xff] }
   0x6   :  { %v44_v17 = vmul.f32 %v180_v1, %v21_v14  ;;  %v83_v23 = vld [vmem:[%s363_s3 + $0x20] sm:$0xff]  ;;  %v45_v24 = vmul.f32 %v180_v1, %v22_v18  ;;  %v46_v29 = vmul.f32 %v180_v1, %v23_v19  ;;  %v47_v30 = vmul.f32 %v180_v1, %v24_v25  ;;  %v85_v36 = vld [vmem:[%s363_s3 + $0x30] sm:$0xff]  ;;  %v86_v37 = vld [vmem:[%s363_s3 + $0x38] sm:$0xff] }
   0x7   :  { %v95_v20 = vadd.f32 %v79_v5, %v63_v9  ;;  %v96_v26 = vadd.f32 %v80_v10, %v64_v15  ;;  %v25_v31 = vld [vmem:[%s360_s0 + $0x40] sm:$0xff]  ;;  %v97_v33 = vadd.f32 %v81_v12, %v65_v21  ;;  %v98_v34 = vadd.f32 %v82_v16, %v66_v22  ;;  %v26_v38 = vld [vmem:[%s360_s0 + $0x48] sm:$0xff]  ;;  %v27_v43 = vld [vmem:[%s360_s0 + $0x50] sm:$0xff] }
   0x8   :  { %v67_v27 = vadd.f32 %v185_v2, %v44_v17  ;;  %v68_v35 = vadd.f32 %v185_v2, %v45_v24  ;;  %v69_v41 = vadd.f32 %v185_v2, %v46_v29  ;;  %v70_v42 = vadd.f32 %v185_v2, %v47_v30  ;;  %v28_v44 = vld [vmem:[%s360_s0 + $0x58] sm:$0xff]  ;;  %v29_v49 = vld [vmem:[%s360_s0 + $0x60] sm:$0xff]  ;;  %v30_v55 = vld [vmem:[%s360_s0 + $0x68] sm:$0xff] }
   0x9   :  { %v111_v32 = vmax.f32 %v95_v20, 0.0  ;;  %v112_v39 = vmax.f32 %v96_v26, 0.0  ;;  %v113_v45 = vmax.f32 %v97_v33, 0.0  ;;  %v114_v46 = vmax.f32 %v98_v34, 0.0  ;;  %v87_v53 = vld [vmem:[%s363_s3 + $0x40] sm:$0xff]  ;;  %v88_v58 = vld [vmem:[%s363_s3 + $0x48] sm:$0xff] }
   0xa   :  { %v99_v40 = vadd.f32 %v83_v23, %v67_v27  ;;  %v100_v47 = vadd.f32 %v84_v28, %v68_v35  ;;  %v48_v48 = vmul.f32 %v180_v1, %v25_v31  ;;  %v101_v51 = vadd.f32 %v85_v36, %v69_v41  ;;  %v31_v61 = vld [vmem:[%s360_s0 + $0x70] sm:$0xff]  ;;  %v32_v62 = vld [vmem:[%s360_s0 + $0x78] sm:$0xff]  ;;  %v91_v10 = vld [vmem:[%s363_s3 + $0x60] sm:$0xff] }
   0xb   :  { %127 = vst [vmem:[%s364_s4] sm:$0xff] %v111_v32  ;;  %128 = vst [vmem:[%s364_s4 + $0x8] sm:$0xff] %v112_v39  ;;  %v102_v52 = vadd.f32 %v86_v37, %v70_v42  ;;  %v49_v54 = vmul.f32 %v180_v1, %v26_v38  ;;  %v50_v59 = vmul.f32 %v180_v1, %v27_v43  ;;  %v89_v4 = vld [vmem:[%s363_s3 + $0x50] sm:$0xff]  ;;  %v90_v5 = vld [vmem:[%s363_s3 + $0x58] sm:$0xff] }
   0xc   :  { %v115_v50 = vmax.f32 %v99_v40, 0.0  ;;  %129 = vst [vmem:[%s364_s4 + $0x10] sm:$0xff] %v113_v45  ;;  %130 = vst [vmem:[%s364_s4 + $0x18] sm:$0xff] %v114_v46  ;;  %v116_v56 = vmax.f32 %v100_v47, 0.0  ;;  %v71_v57 = vadd.f32 %v185_v2, %v48_v48  ;;  %v51_v60 = vmul.f32 %v180_v1, %v28_v44  ;;  %v92_v14 = vld [vmem:[%s363_s3 + $0x68] sm:$0xff]  ;;  %v93_v21 = vld [vmem:[%s363_s3 + $0x70] sm:$0xff] }
   0xd   :  { %v117_v63 = vmax.f32 %v101_v51, 0.0  ;;  %v118_v0 = vmax.f32 %v102_v52, 0.0  ;;  %v72_v3 = vadd.f32 %v185_v2, %v49_v54  ;;  %v52_v6 = vmul.f32 %v180_v1, %v29_v49  ;;  %v94_v22 = vld [vmem:[%s363_s3 + $0x78] sm:$0xff] }
   0xe   :  { %131 = vst [vmem:[%s364_s4 + $0x20] sm:$0xff] %v115_v50  ;;  %132 = vst [vmem:[%s364_s4 + $0x28] sm:$0xff] %v116_v56  ;;  %v103_v7 = vadd.f32 %v87_v53, %v71_v57  ;;  %v73_v8 = vadd.f32 %v185_v2, %v50_v59  ;;  %v74_v9 = vadd.f32 %v185_v2, %v51_v60 }
   0xf   :  { %v53_v11 = vmul.f32 %v180_v1, %v30_v55  ;;  %133 = vst [vmem:[%s364_s4 + $0x30] sm:$0xff] %v117_v63  ;;  %134 = vst [vmem:[%s364_s4 + $0x38] sm:$0xff] %v118_v0  ;;  %v104_v12 = vadd.f32 %v88_v58, %v72_v3  ;;  %v75_v13 = vadd.f32 %v185_v2, %v52_v6 }
  0x10   :  { %v54_v15 = vmul.f32 %v180_v1, %v31_v61  ;;  %v55_v16 = vmul.f32 %v180_v1, %v32_v62  ;;  %v119_v17 = vmax.f32 %v103_v7, 0.0  ;;  %v105_v18 = vadd.f32 %v89_v4, %v73_v8 }
  0x11   :  { %v106_v19 = vadd.f32 %v90_v5, %v74_v9  ;;  %v76_v20 = vadd.f32 %v185_v2, %v53_v11  ;;  %v120_v23 = vmax.f32 %v104_v12, 0.0  ;;  %v107_v24 = vadd.f32 %v91_v10, %v75_v13 }
  0x12   :  { %v77_v25 = vadd.f32 %v185_v2, %v54_v15  ;;  %v78_v26 = vadd.f32 %v185_v2, %v55_v16  ;;  %135 = vst [vmem:[%s364_s4 + $0x40] sm:$0xff] %v119_v17  ;;  %v121_v1 = vmax.f32 %v105_v18, 0.0 }
  0x13   :  { %v122_v27 = vmax.f32 %v106_v19, 0.0  ;;  %v108_v28 = vadd.f32 %v92_v14, %v76_v20  ;;  %136 = vst [vmem:[%s364_s4 + $0x48] sm:$0xff] %v120_v23  ;;  %v123_v29 = vmax.f32 %v107_v24, 0.0 }
  0x14   :  { %v109_v30 = vadd.f32 %v93_v21, %v77_v25  ;;  %v110_v31 = vadd.f32 %v94_v22, %v78_v26  ;;  %137 = vst [vmem:[%s364_s4 + $0x50] sm:$0xff] %v121_v1 }
  0x15   :  { %138 = vst [vmem:[%s364_s4 + $0x58] sm:$0xff] %v122_v27  ;;  %v124_v2 = vmax.f32 %v108_v28, 0.0  ;;  %139 = vst [vmem:[%s364_s4 + $0x60] sm:$0xff] %v123_v29 }
  0x16   :  { %v125_v32 = vmax.f32 %v109_v30, 0.0  ;;  %v126_v33 = vmax.f32 %v110_v31, 0.0 }
  0x17   :  { %140 = vst [vmem:[%s364_s4 + $0x68] sm:$0xff] %v124_v2 }
  0x18   :  { %141 = vst [vmem:[%s364_s4 + $0x70] sm:$0xff] %v125_v32  ;;  %142 = vst [vmem:[%s364_s4 + $0x78] sm:$0xff] %v126_v33 }

</bundles_post_ra>
